<compile_context>
chip_gen: v7x
topology: tpu7x:2x2x1
jax: 0.10.0
libtpu: 0.0.40
codegen_flags: <defaults>
</compile_context>

<pallas_src>
import functools

import numpy as np
import jax
import jax.numpy as jnp
from jax.experimental import pallas as pl
from jax.experimental.pallas import tpu as pltpu


def _round_up(x, m):
    return ((x + m - 1) // m) * m


# --------------------------------------------------------------------------- #
# Pallas kernel: one (component, batch-tile) grid step of the 2-layer MLP.
# --------------------------------------------------------------------------- #
def _genet_ens_kernel(eps_ref, w1_ref, b1_ref, w2_ref, b2_ref, out_ref):
    # Layer 1: Linear(lat_dim -> layer_width) + ReLU.  bf16 MXU, f32 accumulate.
    h1 = jnp.dot(eps_ref[...], w1_ref[...], preferred_element_type=jnp.float32)
    h1 = jnp.maximum(h1 + b1_ref[...], 0.0)
    # Layer 2: Linear(layer_width -> output_dim_padded), no activation.
    h2 = jnp.dot(h1.astype(jnp.bfloat16), w2_ref[...],
                 preferred_element_type=jnp.float32)
    out_ref[...] = (h2 + b2_ref[...]).astype(out_ref.dtype)


@functools.partial(jax.jit, static_argnames=("block_n",))
def _ens_mlp(eps, w1, b1, w2, b2, *, block_n):
    """eps:(C,Np,K) bf16, w1:(C,K,H) bf16, b1:(C,1,H) f32,
       w2:(C,H,Op) bf16, b2:(C,1,Op) f32  ->  (C,Np,Op) f32."""
    nb_comp, n_pad, lat_dim = eps.shape
    h_pad = w1.shape[2]
    out_pad = w2.shape[2]
    grid = (nb_comp, n_pad // block_n)

    return pl.pallas_call(
        _genet_ens_kernel,
        out_shape=jax.ShapeDtypeStruct((nb_comp, n_pad, out_pad), jnp.float32),
        grid=grid,
        in_specs=[
            # epsilon: tiled over (component, batch tile)
            pl.BlockSpec((None, block_n, lat_dim), lambda c, i: (c, i, 0)),
            # per-component weights / biases: change only on the outer grid axis
            pl.BlockSpec((None, lat_dim, h_pad), lambda c, i: (c, 0, 0)),
            pl.BlockSpec((None, 1, h_pad), lambda c, i: (c, 0, 0)),
            pl.BlockSpec((None, h_pad, out_pad), lambda c, i: (c, 0, 0)),
            pl.BlockSpec((None, 1, out_pad), lambda c, i: (c, 0, 0)),
        ],
        out_specs=pl.BlockSpec((None, block_n, out_pad), lambda c, i: (c, i, 0)),
        compiler_params=pltpu.CompilerParams(
            # every (c, i) step independent -> megacore / 2-TC sharding on v7x
            dimension_semantics=("parallel", "parallel"),
            # above v5e's 16 MiB scoped default, below v7x's 64 MiB physical VMEM
            vmem_limit_bytes=48 * 1024 * 1024,
        ),
    )(eps, w1, b1, w2, b2)


# --------------------------------------------------------------------------- #
# Parameter construction (glue): mimics GeNet.__init__ initialization.
# --------------------------------------------------------------------------- #
def init_params(key, nb_comp, lat_dim, layer_width, output_dim, init_w, init_b):
    """Layer 1: nn.Linear default init U(-1/sqrt(fan_in), 1/sqrt(fan_in)).
       Layer 2: weight ~ N(0, init_w), bias ~ N(0, init_b)  (per GeNet.__init__).
       Weights stored [in, out] (transposed vs. PyTorch) so the kernel does x @ W."""
    k1w, k1b, k2w, k2b = jax.random.split(key, 4)
    bound = 1.0 / float(np.sqrt(lat_dim))
    w1 = jax.random.uniform(k1w, (nb_comp, lat_dim, layer_width), jnp.float32, -bound, bound)
    b1 = jax.random.uniform(k1b, (nb_comp, 1, layer_width), jnp.float32, -bound, bound)
    w2 = init_w * jax.random.normal(k2w, (nb_comp, layer_width, output_dim), jnp.float32)
    b2 = init_b * jax.random.normal(k2b, (nb_comp, 1, output_dim), jnp.float32)
    return w1, b1, w2, b2


def pack_params(params):
    """Zero-pad feature dims to multiples of 128 (lane-dense stores / MXU alignment)
       and cast weights to bf16; biases stay f32 (added to the f32 accumulator)."""
    w1, b1, w2, b2 = params
    layer_width = w1.shape[2]
    output_dim = w2.shape[2]
    h_pad = _round_up(layer_width, 128)
    o_pad = _round_up(output_dim, 128)
    w1 = jnp.pad(w1, ((0, 0), (0, 0), (0, h_pad - layer_width)))
    b1 = jnp.pad(b1, ((0, 0), (0, 0), (0, h_pad - layer_width)))
    w2 = jnp.pad(w2, ((0, 0), (0, h_pad - layer_width), (0, o_pad - output_dim)))
    b2 = jnp.pad(b2, ((0, 0), (0, 0), (0, o_pad - output_dim)))
    packed = (w1.astype(jnp.bfloat16), b1, w2.astype(jnp.bfloat16), b2)
    return packed, output_dim


# --------------------------------------------------------------------------- #
# Module-level wrappers.
# --------------------------------------------------------------------------- #
def genet_ens_apply(eps, packed, output_dim, *, max_block_n=512):
    """Run every component's MLP on its own epsilon batch: (C, n, lat) -> (C, n, out)."""
    nb_comp, n, lat_dim = eps.shape
    block_n = min(max_block_n, _round_up(n, 16))     # 16-row granularity (bf16 sublanes)
    n_pad = _round_up(n, block_n)
    if n_pad != n:
        eps = jnp.pad(eps, ((0, 0), (0, n_pad - n), (0, 0)))
    out = _ens_mlp(eps, *packed, block_n=block_n)
    return out[:, :n, :output_dim]


def genet_ens_sample(key, packed, output_dim, lat_dim, n):
    """Equivalent of GeNetEns.sample(n): stacked (nb_comp, n, output_dim)."""
    nb_comp = packed[0].shape[0]
    eps = jax.random.normal(key, (nb_comp, n, lat_dim), jnp.float32).astype(jnp.bfloat16)
    return eps, genet_ens_apply(eps, packed, output_dim)


def genet_ens_forward(key, packed, output_dim, lat_dim, n):
    """Equivalent of GeNetEns.forward(n): multinomial counts per component,
       concatenated along the batch axis (n rows total).  The multinomial draw and
       the ragged concat are host-side glue; the MLP math runs in the Pallas kernel."""
    nb_comp = packed[0].shape[0]
    k_cnt, k_eps = jax.random.split(key)
    cats = jax.random.categorical(k_cnt, jnp.zeros((nb_comp,)), shape=(n,))
    counts = np.asarray(jnp.bincount(cats, length=nb_comp))
    n_max = int(counts.max()) if n > 0 else 1
    eps = jax.random.normal(k_eps, (nb_comp, max(n_max, 1), lat_dim),
                            jnp.float32).astype(jnp.bfloat16)
    out = genet_ens_apply(eps, packed, output_dim)
    return jnp.concatenate([out[c, : int(counts[c])] for c in range(nb_comp)], axis=0)


def reference_apply(eps, packed, output_dim):
    """Pure-JAX reference of the same (bf16-weight, f32-accumulate) computation."""
    w1, b1, w2, b2 = packed
    e = eps.astype(jnp.float32)
    h1 = jnp.maximum(jnp.einsum("cnk,ckh->cnh", e, w1.astype(jnp.float32)) + b1, 0.0)
    h1 = h1.astype(jnp.bfloat16).astype(jnp.float32)
    out = jnp.einsum("cnh,cho->cno", h1, w2.astype(jnp.float32)) + b2
    return out[:, :, :output_dim]


if __name__ == "__main__":
    nb_comp = 3
    lat_dim = 32
    layer_width = 128
    output_dim = 64
    init_w, init_b = 0.1, 0.01
    n = 1024                     # sampled latents per component (grid = (3, 2))

    key = jax.random.PRNGKey(0)
    k_params, k_sample, k_forward = jax.random.split(key, 3)

    params = init_params(k_params, nb_comp, lat_dim, layer_width, output_dim,
                         init_w, init_b)
    packed, out_dim = pack_params(params)

    # sample(n): stacked ensemble output (nb_comp, n, output_dim)
    eps, out = genet_ens_sample(k_sample, packed, out_dim, lat_dim, n)
    out = jax.block_until_ready(out)
    assert out.shape == (nb_comp, n, output_dim)

    ref = reference_apply(eps, packed, out_dim)
    assert jnp.allclose(out, ref, atol=1e-2, rtol=1e-2), \
        float(jnp.max(jnp.abs(out - ref)))

    # forward(n): multinomial mixture draw -> concatenated (n, output_dim)
    mix = genet_ens_forward(k_forward, packed, out_dim, lat_dim, n=200)
    mix = jax.block_until_ready(mix)
    assert mix.shape == (200, output_dim)
    assert bool(jnp.all(jnp.isfinite(mix)))

    print("KERNEL_OK")
</pallas_src>

<mosaic_0001>
module attributes {stable_mosaic.version = 11 : i64} {
  func.func @_genet_ens_kernel(%arg0: i32, %arg1: i32, %arg2: memref<1x512x32xbf16, #tpu.memory_space<vmem>>, %arg3: memref<1x32x128xbf16, #tpu.memory_space<vmem>>, %arg4: memref<1x1x128xf32, #tpu.memory_space<vmem>>, %arg5: memref<1x128x128xbf16, #tpu.memory_space<vmem>>, %arg6: memref<1x1x128xf32, #tpu.memory_space<vmem>>, %arg7: memref<1x512x128xf32, #tpu.memory_space<vmem>>) attributes {dimension_semantics = [#tpu.dimension_semantics<parallel>, #tpu.dimension_semantics<parallel>], iteration_bounds = array<i64: 3, 2>, scalar_prefetch = 0 : i64, scratch_operands = 0 : i64, tpu.core_type = #tpu.core_type<tc>, window_params = [{transform_indices = @transform_0, window_bounds = array<i64: 1, 512, 32>}, {transform_indices = @transform_1, window_bounds = array<i64: 1, 32, 128>}, {transform_indices = @transform_2, window_bounds = array<i64: 1, 1, 128>}, {transform_indices = @transform_3, window_bounds = array<i64: 1, 128, 128>}, {transform_indices = @transform_4, window_bounds = array<i64: 1, 1, 128>}, {transform_indices = @transform_5, window_bounds = array<i64: 1, 512, 128>}]} {
    %c0 = arith.constant 0 : index
    %c0_0 = arith.constant 0 : index
    %c0_1 = arith.constant 0 : index
    %0 = vector.load %arg2[%c0, %c0_0, %c0_1] : memref<1x512x32xbf16, #tpu.memory_space<vmem>>, vector<1x512x32xbf16>
    %1 = vector.shape_cast %0 : vector<1x512x32xbf16> to vector<512x32xbf16>
    %c0_2 = arith.constant 0 : index
    %c0_3 = arith.constant 0 : index
    %c0_4 = arith.constant 0 : index
    %2 = vector.load %arg3[%c0_2, %c0_3, %c0_4] : memref<1x32x128xbf16, #tpu.memory_space<vmem>>, vector<1x32x128xbf16>
    %3 = vector.shape_cast %2 : vector<1x32x128xbf16> to vector<32x128xbf16>
    %cst = arith.constant dense<0.000000e+00> : vector<512x128xf32>
    %4 = tpu.matmul %1, %3, %cst {dimension_numbers = #tpu.dot_dimension_numbers<[1], [0], [0], [1], [0, 0, 1, 1], [], []>} : vector<512x32xbf16>, vector<32x128xbf16>, vector<512x128xf32> -> vector<512x128xf32>
    %c0_5 = arith.constant 0 : index
    %c0_6 = arith.constant 0 : index
    %c0_7 = arith.constant 0 : index
    %5 = vector.load %arg4[%c0_5, %c0_6, %c0_7] : memref<1x1x128xf32, #tpu.memory_space<vmem>>, vector<1x1x128xf32>
    %6 = vector.shape_cast %5 : vector<1x1x128xf32> to vector<1x128xf32>
    %7 = vector.broadcast %6 : vector<1x128xf32> to vector<512x128xf32>
    %8 = arith.addf %4, %7 : vector<512x128xf32>
    %cst_8 = arith.constant 0.000000e+00 : f32
    %9 = vector.broadcast %cst_8 : f32 to vector<512x128xf32>
    %10 = arith.maximumf %8, %9 : vector<512x128xf32>
    %11 = arith.truncf %10 : vector<512x128xf32> to vector<512x128xbf16>
    %c0_9 = arith.constant 0 : index
    %c0_10 = arith.constant 0 : index
    %c0_11 = arith.constant 0 : index
    %12 = vector.load %arg5[%c0_9, %c0_10, %c0_11] : memref<1x128x128xbf16, #tpu.memory_space<vmem>>, vector<1x128x128xbf16>
    %13 = vector.shape_cast %12 : vector<1x128x128xbf16> to vector<128x128xbf16>
    %cst_12 = arith.constant dense<0.000000e+00> : vector<512x128xf32>
    %14 = tpu.matmul %11, %13, %cst_12 {dimension_numbers = #tpu.dot_dimension_numbers<[1], [0], [0], [1], [0, 0, 1, 1], [], []>} : vector<512x128xbf16>, vector<128x128xbf16>, vector<512x128xf32> -> vector<512x128xf32>
    %c0_13 = arith.constant 0 : index
    %c0_14 = arith.constant 0 : index
    %c0_15 = arith.constant 0 : index
    %15 = vector.load %arg6[%c0_13, %c0_14, %c0_15] : memref<1x1x128xf32, #tpu.memory_space<vmem>>, vector<1x1x128xf32>
    %16 = vector.shape_cast %15 : vector<1x1x128xf32> to vector<1x128xf32>
    %17 = vector.broadcast %16 : vector<1x128xf32> to vector<512x128xf32>
    %18 = arith.addf %14, %17 : vector<512x128xf32>
    %c0_16 = arith.constant 0 : index
    %c0_17 = arith.constant 0 : index
    %c0_18 = arith.constant 0 : index
    %19 = vector.load %arg7[%c0_16, %c0_17, %c0_18] : memref<1x512x128xf32, #tpu.memory_space<vmem>>, vector<1x512x128xf32>
    %20 = vector.shape_cast %19 : vector<1x512x128xf32> to vector<512x128xf32>
    %21 = vector.shape_cast %18 : vector<512x128xf32> to vector<1x512x128xf32>
    tpu.vector_store %arg7[%c0_16, %c0_17, %c0_18], %21 {strides = array<i32>} : memref<1x512x128xf32, #tpu.memory_space<vmem>>, vector<1x512x128xf32>,
    return
  }
  func.func @transform_0(%arg0: i32, %arg1: i32) -> (i32, i32, i32) {
    %c0_i32 = arith.constant 0 : i32
    %c0_i32_0 = arith.constant 0 : i32
    return %arg0, %arg1, %c0_i32 : i32, i32, i32
  }
  func.func @transform_1(%arg0: i32, %arg1: i32) -> (i32, i32, i32) {
    %c0_i32 = arith.constant 0 : i32
    %c0_i32_0 = arith.constant 0 : i32
    %c0_i32_1 = arith.constant 0 : i32
    return %arg0, %c0_i32, %c0_i32_0 : i32, i32, i32
  }
  func.func @transform_2(%arg0: i32, %arg1: i32) -> (i32, i32, i32) {
    %c0_i32 = arith.constant 0 : i32
    %c0_i32_0 = arith.constant 0 : i32
    %c0_i32_1 = arith.constant 0 : i32
    return %arg0, %c0_i32, %c0_i32_0 : i32, i32, i32
  }
  func.func @transform_3(%arg0: i32, %arg1: i32) -> (i32, i32, i32) {
    %c0_i32 = arith.constant 0 : i32
    %c0_i32_0 = arith.constant 0 : i32
    %c0_i32_1 = arith.constant 0 : i32
    return %arg0, %c0_i32, %c0_i32_0 : i32, i32, i32
  }
  func.func @transform_4(%arg0: i32, %arg1: i32) -> (i32, i32, i32) {
    %c0_i32 = arith.constant 0 : i32
    %c0_i32_0 = arith.constant 0 : i32
    %c0_i32_1 = arith.constant 0 : i32
    return %arg0, %c0_i32, %c0_i32_0 : i32, i32, i32
  }
  func.func @transform_5(%arg0: i32, %arg1: i32) -> (i32, i32, i32) {
    %c0_i32 = arith.constant 0 : i32
    %c0_i32_0 = arith.constant 0 : i32
    return %arg0, %arg1, %c0_i32 : i32, i32, i32
  }
}

</mosaic_0001>

<bundles_post_ra>
// kernel: _ens_mlp.1
= control target key start
LH: loop header
LB: loop body
LE: loop exit
PB: predicated region body
PF: predicated region fallthrough
CT: control target
= control target key end

     0   :  { %s3177_s0 = inlined_call_operand.vmem [shape: bf16[3,1024,32], index: 0, kind: input, shape index: {}]   ;;  %s3178_s1 = inlined_call_operand.hbm [shape: bf16[3,32,128], index: 1, kind: input, shape index: {}]   ;;  %s3179_s2 = inlined_call_operand.hbm [shape: f32[3,1,128], index: 2, kind: input, shape index: {}]   ;;  %s3180_s3 = inlined_call_operand.hbm [shape: bf16[3,128,128], index: 3, kind: input, shape index: {}]   ;;  %s3181_s4 = inlined_call_operand.hbm [shape: f32[3,1,128], index: 4, kind: input, shape index: {}]   ;;  %s3182_s5 = inlined_call_operand.hbm [shape: f32[3,1024,128], index: 5, kind: output, shape index: {}]  }
   0x1   :  { %3194 = sst [smem:[#allocation24_spill]] %s3178_s1 }
   0x2   :  { %3195 = sst [smem:[#allocation25_spill]] %s3179_s2 }
   0x3   :  { %10 = vsyncpa [#allocation3], 0 }
   0x4   :  { %12 = vsyncpa [#allocation3 + $0x1], 0 }
   0x5   :  { %13 = vsyncpa [#allocation6], 0 }
   0x6   :  { %15 = vsyncpa [#allocation6 + $0x1], 0 }
   0x7   :  { %16 = vsyncpa [#allocation9], 0 }
   0x8   :  { %18 = vsyncpa [#allocation9 + $0x1], 0 }
   0x9   :  { %19 = vsyncpa [#allocation4], 0 }
   0xa   :  { %21 = vsyncpa [#allocation4 + $0x1], 0  ;;  %s2529_s18 = smov 0   ;;  %s2531_s19 = smov 0  }
   0xb   :  { %s2533_s20 = smov 0   ;;  %s2535_s21 = smov 0  }
   0xc   :  { %s2537_s22 = smov 0   ;;  %s2539_s23 = smov 0  }
   0xd   :  { %s2541_s24 = smov 0   ;;  %s2543_s25 = smov 0  }
   0xe   :  { %s2545_s26 = smov 0   ;;  %s2547_s27 = smov 0  }
   0xf   :  { %s2549_s28 = smov 0  }
  0x10 LB: > { %3196 = sst [smem:[#allocation15_spill]] %s2448_s18  ;;  %s2583_s29 = sadd.s32 4294967295, %s2488_s28   ;;  %s2488_s28 = sphi %s2549_s28, %s27_s28   ;;  %s2484_s27 = sphi %s2547_s27, %s3235_s27   ;;  %s2480_s26 = sphi %s2545_s26, %s3228_s26   ;;  %s2476_s25 = sphi %s2543_s25, %s3234_s25   ;;  %s2472_s24 = sphi %s2541_s24, %s3227_s24   ;;  %s2468_s23 = sphi %s2539_s23, %s3226_s23   ;;  %s2464_s22 = sphi %s2537_s22, %s3233_s22   ;;  %s2460_s21 = sphi %s2535_s21, %s3232_s21   ;;  %s2456_s20 = sphi %s2533_s20, %s3224_s20   ;;  %s2452_s19 = sphi %s2531_s19, %s3231_s19   ;;  %s2448_s18 = sphi %s2529_s18, %s3230_s18  }
  0x11   : > { %3197 = sst [smem:[#allocation16_spill]] %s2456_s20  ;;  %s1735_s30 = sadd.s32 4294967294, %s2488_s28  }
  0x12   : > { %3198 = sst [smem:[#allocation17_spill]] %s2468_s23  ;;  %s36_s6 = sadd.s32 1, %s2480_s26 }
  0x13   : > { %3199 = sst [smem:[#allocation18_spill]] %s2480_s26  ;;  %s39_s7 = sadd.s32 1, %s2484_s27 }
  0x14   : > { %p37_p0 = scmp.ge.s32.totalorder %s36_s6, 2  ;;  %s74_s8 = sadd.s32 1, %s2468_s23 }
  0x15   : > { %p81_p1 = scmp.ne.s32.totalorder %s2468_s23, %s2464_s22  ;;  %p82_p2 = scmp.eq.s32.totalorder %s2488_s28, 0 }
  0x16   : > { %s3237_s6 = smov (%p37_p0, %s36_s6), 0  ;;  %s3239_s7 = smov (!%p37_p0, %s39_s7), %s2484_s27 }
  0x17   : > { %3200 = sst [smem:[#allocation19_spill]] %s3237_s6  ;;  %p2595_p3 = por %p82_p2, %p81_p1 }
  0x18   : > { %p87_p4 = scmp.ne.s32.totalorder %s2464_s22, %s2460_s21  ;;  %p41_p5 = scmp.ge.s32.totalorder %s3239_s7, 3 }
  0x19   : > { %p88_p6 = scmp.eq.s32.totalorder %s2583_s29, 0  ;;  %s176_s10 = ssub.s32 %s2480_s26, %s3237_s6 }
  0x1a   : > { %s180_s11 = sadd.s32 1, %s2456_s20  ;;  %s3241_s7 = smov (%p41_p5, %s3239_s7), 0 }
  0x1b   : > { %3202 = sst [smem:[#allocation20_spill]] %s3241_s7  ;;  %p2606_p7 = por %p88_p6, %p87_p4 }
  0x1c   : > { %p190_p8 = scmp.ne.s32.totalorder %s2456_s20, %s2452_s19  ;;  %s71_s13 = ssub.s32 %s2484_s27, %s3241_s7 }
  0x1d   : > { %s3203_s12 = scalar_select %p2606_p7, 1, 0 }
  0x1e   : > { %p191_p9 = scmp.eq.s32.totalorder %s2583_s29, 5  ;;  %p72_p10 = scmp.eq.s32.totalorder %s71_s13, 0 }
  0x1f   : > { %s177_s14 = sor.u32 %s176_s10, %s71_s13  ;;  %p196_p13 = scmp.ne.s32.totalorder %s2452_s19, %s2448_s18 }
  0x20   : > { %p178_p11 = scmp.eq.s32.totalorder %s177_s14, 0  ;;  %p2615_p12 = por %p191_p9, %p190_p8 }
  0x21   : > { %s2620_s16 = scalar_select %p72_p10, %s2468_s23, %s74_s8  }
  0x22   : > { %s3204_s15 = scalar_select %p2615_p12, 1, 0 }
  0x23   : > { %3205 = sst [smem:[#allocation21_spill]] %s2620_s16  ;;  %p197_p0 = scmp.eq.s32.totalorder %s1735_s30, 5 }
  0x24   : > { %s2623_s17 = scalar_select %p178_p11, %s2456_s20, %s180_s11  }
  0x25   : > { %p2102_p1 = scmp.lt.s32.totalorder %s2488_s28, 6  ;;  %p2628_p2 = por %p197_p0, %p196_p13 }
  0x26   : > { %3206 = sst [smem:[#allocation22_spill]] %s2623_s17  ;;  %s2633_s7 = sand.u32 1, %s2468_s23  }
  0x27   : > { %s3207_s21 = scalar_select %p2628_p2, 1, 0 }
  0x28   : > { %p2637_p4 = pnand %p2102_p1, %p2595_p3  ;;  %s251_s8 = sand.u32 1, %s2488_s28  }
  0x29   : > { %3208 = sst [smem:[#allocation23_spill]] %s3207_s21  ;;  %s3187_s13 = sshll.u32 %s2484_s27, 4 }
  0x2a   : > { %s3209_s10 = scalar_select %p2637_p4, 1, 0 }
  0x2b   : > { %s3210_s2 = sld [smem:[#allocation25_spill]]  ;;  %s254_s6 = scalar_lea.vmem [#allocation5], %s2633_s7 }
  0x2c   : > { %s261_s9 = sshll.u32 %s254_s6, 4  ;;  %s2654_s26 = scalar_lea.sflag [#allocation6], %s251_s8  ;;  %s2651_s9 = int_to_ptr.vmem [resolvable:$true] %s261_s9 }
  0x2d   : > { %p2660_p6 = pneg %p2637_p4 }
  0x31   : > { %s2648_s30 = scalar_lea.hbm %s3210_s2, %s3187_s13  ;;  %s2243_s6 = scalar_lea.hbm %s3210_s2, 48 }
  0x32   : > { %s2238_s16 = scalar_lea.hbm %s2648_s30, 16  ;;  %p2244_p10 = scmp.lt.u32.totalorder %s2648_s30, %s3210_s2 }
  0x33   : > { %p2239_p5 = scmp.ne.s32.totalorder %s2648_s30, %s2238_s16  ;;  %p2245_p11 = scmp.lt.u32.totalorder %s2243_s6, %s2238_s16 }
  0x34   : > { %p2247_p0 = scmp.lt.u32.totalorder %s2238_s16, %s2648_s30 }
  0x35   : > { %p2241_p8 = pnand %p2660_p6, %p2239_p5  ;;  %p2246_p13 = por %p2245_p11, %p2244_p10 }
  0x37   : > { %p2242_p9 = pneg %p2241_p8  ;;  %p2248_p1 = por %p2247_p0, %p2246_p13 }
  0x39   : > { %p2249_p3 = pnand %p2248_p1, %p2242_p9 }
  0x3b   : > { %2252 = shalt.err (!%p2249_p3)
}
  0x3c   : > { %s2253_s8 = scalar_lea.vmem %s2651_s9, 16  ;;  %s2490_s11 = smov [#allocation5]  }
  0x3d   : > { %p2254_p5 = scmp.ne.s32.totalorder %s2651_s9, %s2253_s8  ;;  %s2258_s14 = sshll.u32 %s2490_s11, 4  ;;  %s2259_s14 = int_to_ptr.vmem [resolvable:$false] %s2258_s14 }
  0x3e   : > { %s2260_s17 = scalar_lea.vmem %s2259_s14, 32  ;;  %p2261_p12 = scmp.lt.s32.totalorder %s2651_s9, %s2259_s14 }
  0x3f   : > { %p2256_p8 = pnand %p2254_p5, %p2660_p6  ;;  %p2262_p7 = scmp.lt.s32.totalorder %s2260_s17, %s2253_s8 }
  0x41   : > { %p2257_p2 = pneg %p2256_p8  ;;  %p2263_p10 = por %p2262_p7, %p2261_p12 }
  0x43   : > { %p2264_p11 = pnand %p2263_p10, %p2257_p2 }
  0x45   : > { %2267 = shalt.err (!%p2264_p11)
}
  0x46   : > { %2091 = dma.hbm_to_vmem [thread:$0]  (!%p2637_p4), %s2648_s30, 16, %s2651_s9, %s2654_s26  }
  0x47   : > { %p304_p3 = scmp.lt.s32.totalorder %s2488_s28, 7  ;;  %p3212_p9 = scmp.ge.s32.totalorder %s2488_s28, 1 }
  0x48   : > { %s1738_s13 = sshll.u32 %s2633_s7, 4  ;;  %s1835_s6 = sshll.u32 %s2484_s27, 8 }
  0x49   : > { %p2687_p13 = pnand %p3212_p9, %p304_p3  ;;  %s3214_s1 = sld [smem:[#allocation24_spill]] }
  0x4a   : > { %s234_s17 = scalar_lea.vmem [#allocation2], %s1738_s13  ;;  %s1742_s30 = sshll.u32 %s2633_s7, 6 }
  0x4b   : > { %s3213_s16 = scalar_select %p2687_p13, 1, 0 }
  0x4c   : > { %s241_s2 = sshll.u32 %s234_s17, 4  ;;  %s231_s9 = scalar_lea.sflag [#allocation3], %s2633_s7  ;;  %s2698_s2 = int_to_ptr.vmem [resolvable:$true] %s241_s2 }
  0x4f   : > { %s2696_s14 = scalar_lea.hbm %s3214_s1, %s1835_s6  ;;  %s2273_s6 = scalar_lea.hbm %s3214_s1, 768 }
  0x50   : > { %s2268_s20 = scalar_lea.hbm %s2696_s14, 256  ;;  %p2274_p0 = scmp.lt.u32.totalorder %s2696_s14, %s3214_s1 }
  0x51   : > { %p2269_p7 = scmp.ne.s32.totalorder %s2696_s14, %s2268_s20  ;;  %p2275_p1 = scmp.lt.u32.totalorder %s2273_s6, %s2268_s20 }
  0x52   : > { %p2277_p8 = scmp.lt.u32.totalorder %s2268_s20, %s2696_s14 }
  0x53   : > { %p2271_p12 = pnand %p2269_p7, %p2660_p6  ;;  %p2276_p5 = por %p2275_p1, %p2274_p0 }
  0x55   : > { %p2272_p2 = pneg %p2271_p12  ;;  %p2278_p10 = por %p2277_p8, %p2276_p5 }
  0x57   : > { %p2279_p11 = pnand %p2278_p10, %p2272_p2 }
  0x59   : > { %2282 = shalt.err (!%p2279_p11)
}
  0x5a   : > { %s2283_s13 = scalar_lea.vmem %s2698_s2, 256  ;;  %s2491_s18 = smov [#allocation2]  }
  0x5b   : > { %p2284_p3 = scmp.ne.s32.totalorder %s2698_s2, %s2283_s13  ;;  %s2288_s21 = sshll.u32 %s2491_s18, 4  ;;  %s2289_s21 = int_to_ptr.vmem [resolvable:$false] %s2288_s21 }
  0x5c   : > { %s2290_s17 = scalar_lea.vmem %s2289_s21, 512  ;;  %p2291_p12 = scmp.lt.s32.totalorder %s2698_s2, %s2289_s21 }
  0x5d   : > { %p2286_p9 = pnand %p2284_p3, %p2660_p6  ;;  %p2292_p13 = scmp.lt.s32.totalorder %s2290_s17, %s2283_s13 }
  0x5f   : > { %p2287_p7 = pneg %p2286_p9  ;;  %p2293_p0 = por %p2292_p13, %p2291_p12 }
  0x61   : > { %p2294_p1 = pnand %p2293_p0, %p2287_p7 }
  0x63   : > { %2297 = shalt.err (!%p2294_p1)
}
  0x64   : > { %s2492_s20 = smov 64   ;;  %s2493_s6 = smov 4  }
  0x65   : > { %2088 = dma.hbm_to_vmem [thread:$0]  (!%p2637_p4), %s2696_s14, 256, %s2698_s2, %s231_s9, %s2492_s20, %s2492_s20, %s2493_s6  }
  0x66   : > { %s1836_s8 = sshll.u32 %s2484_s27, 10  ;;  %s272_s21 = scalar_lea.vmem [#allocation7], %s1742_s30 }
  0x67   : > { %s2732_s18 = scalar_lea.hbm %s3180_s3, %s1836_s8  ;;  %s279_s17 = sshll.u32 %s272_s21, 4  ;;  %s2736_s17 = int_to_ptr.vmem [resolvable:$true] %s279_s17 }
  0x68   : > { %s2298_s1 = scalar_lea.hbm %s2732_s18, 1024  ;;  %s2303_s9 = scalar_lea.hbm %s3180_s3, 3072 }
  0x69   : > { %p2299_p13 = scmp.ne.s32.totalorder %s2732_s18, %s2298_s1  ;;  %p2304_p8 = scmp.lt.u32.totalorder %s2732_s18, %s3180_s3 }
  0x6a   : > { %p2305_p10 = scmp.lt.u32.totalorder %s2303_s9, %s2298_s1  ;;  %p2307_p3 = scmp.lt.u32.totalorder %s2298_s1, %s2732_s18 }
  0x6b   : > { %p2301_p2 = pnand %p2299_p13, %p2660_p6 }
  0x6c   : > { %p2306_p11 = por %p2305_p10, %p2304_p8 }
  0x6d   : > { %p2302_p5 = pneg %p2301_p2 }
  0x6e   : > { %p2308_p9 = por %p2307_p3, %p2306_p11 }
  0x70   : > { %p2309_p7 = pnand %p2308_p9, %p2302_p5 }
  0x72   : > { %2312 = shalt.err (!%p2309_p7)
}
  0x73   : > { %s2313_s30 = scalar_lea.vmem %s2736_s17, 1024  ;;  %s2494_s13 = smov [#allocation7]  }
  0x74   : > { %p2314_p12 = scmp.ne.s32.totalorder %s2736_s17, %s2313_s30  ;;  %s2318_s21 = sshll.u32 %s2494_s13, 4  ;;  %s2319_s21 = int_to_ptr.vmem [resolvable:$false] %s2318_s21 }
  0x75   : > { %s2320_s2 = scalar_lea.vmem %s2319_s21, 2048  ;;  %p2321_p13 = scmp.lt.s32.totalorder %s2736_s17, %s2319_s21 }
  0x76   : > { %p2316_p0 = pnand %p2314_p12, %p2660_p6  ;;  %p2322_p2 = scmp.lt.s32.totalorder %s2320_s2, %s2313_s30 }
  0x78   : > { %p2317_p1 = pneg %p2316_p0  ;;  %p2323_p8 = por %p2322_p2, %p2321_p13 }
  0x7a   : > { %p2324_p10 = pnand %p2323_p8, %p2317_p1 }
  0x7c   : > { %2327 = shalt.err (!%p2324_p10)
}
  0x7d   : > { %2094 = dma.hbm_to_vmem [thread:$0]  (!%p2637_p4), %s2732_s18, 1024, %s2736_s17, %s2654_s26, %s2492_s20, %s2492_s20, %s2493_s6  }
  0x7e   : > { %s3215_s1 = sshll.u32 %s2484_s27, 4  ;;  %s292_s11 = scalar_lea.vmem [#allocation8], %s2633_s7 }
  0x7f   : > { %s2768_s8 = scalar_lea.hbm %s3181_s4, %s3215_s1  ;;  %s299_s30 = sshll.u32 %s292_s11, 4  ;;  %s300_s30 = int_to_ptr.vmem [resolvable:$true] %s299_s30 }
  0x80   : > { %s290_s13 = scalar_lea.sflag [#allocation9], %s2633_s7  ;;  %s2328_s21 = scalar_lea.hbm %s2768_s8, 16 }
  0x81   : > { %p2329_p5 = scmp.ne.s32.totalorder %s2768_s8, %s2328_s21  ;;  %s2333_s6 = scalar_lea.hbm %s3181_s4, 48 }
  0x82   : > { %p2334_p9 = scmp.lt.u32.totalorder %s2768_s8, %s3181_s4  ;;  %p2335_p7 = scmp.lt.u32.totalorder %s2333_s6, %s2328_s21 }
  0x83   : > { %p2331_p11 = pnand %p2329_p5, %p2660_p6  ;;  %p2337_p0 = scmp.lt.u32.totalorder %s2328_s21, %s2768_s8 }
  0x84   : > { %p2336_p12 = por %p2335_p7, %p2334_p9 }
  0x85   : > { %p2332_p3 = pneg %p2331_p11 }
  0x86   : > { %p2338_p1 = por %p2337_p0, %p2336_p12 }
  0x88   : > { %p2339_p13 = pnand %p2338_p1, %p2332_p3 }
  0x8a   : > { %2342 = shalt.err (!%p2339_p13)
}
  0x8b   : > { %s2343_s7 = scalar_lea.vmem %s300_s30, 16  ;;  %s2495_s2 = smov [#allocation8]  }
  0x8c   : > { %p2344_p2 = scmp.ne.s32.totalorder %s300_s30, %s2343_s7  ;;  %s2348_s1 = sshll.u32 %s2495_s2, 4  ;;  %s2349_s1 = int_to_ptr.vmem [resolvable:$false] %s2348_s1 }
  0x8d   : > { %s2350_s14 = scalar_lea.vmem %s2349_s1, 32  ;;  %p2351_p5 = scmp.lt.s32.totalorder %s300_s30, %s2349_s1 }
  0x8e   : > { %p2346_p8 = pnand %p2344_p2, %p2660_p6  ;;  %p2352_p11 = scmp.lt.s32.totalorder %s2350_s14, %s2343_s7 }
  0x90   : > { %p2347_p10 = pneg %p2346_p8  ;;  %p2353_p4 = por %p2352_p11, %p2351_p5 }
  0x92   : > { %p2354_p7 = pnand %p2353_p4, %p2347_p10 }
  0x94   : > { %2357 = shalt.err (!%p2354_p7)
}
  0x95   : > { %p3216_p9 = scmp.ne.s32.totalorder %s3209_s10, 0  ;;  %p3217_p3 = scmp.ne.s32.totalorder %s3213_s16, 0 }
  0x96   : > { %s2792_s23 = sand.u32 (!%p3217_p3), 1, %s2464_s22   ;;  %p3218_p6 = scmp.ne.s32.totalorder (!%p3217_p3), %s3203_s12, 0 }
  0x97   : > { %2097 = dma.hbm_to_vmem [thread:$0]  (!%p3216_p9), %s2768_s8, 16, %s300_s30, %s290_s13  }
  0x98   : > { %308 = sbr.rel (%p3217_p3) target bundleno = 750 (0x2ee), region = 40  ;;  %s1747_s9 = sshll.u32 (!%p3217_p3), %s2792_s23, 4 }
  0x99   : > { %s311_s11 = scalar_lea.sflag (!%p3217_p3), [#allocation3], %s2792_s23  ;;  %s314_s21 = scalar_lea.vmem (!%p3217_p3), [#allocation2], %s1747_s9 }
  0x9f   : > { %2431 = dma.done.wait (%p3218_p6), %s311_s11, 256  }
  0xa0   : > { %2433 = vsyncadd (%p3218_p6), %s311_s11, 4294967040  ;;  %s319_s10 = sand.u32 1, %s2583_s29   ;;  %s322_s8 = scalar_lea.vmem [#allocation5], %s2792_s23 }
  0xa1   : > { %s320_s16 = scalar_lea.sflag [#allocation6], %s319_s10 }
  0xa2   : > { %2435 = dma.done.wait (%p3218_p6), %s320_s16, 1040  }
  0xa3   : > { %2437 = vsyncadd (%p3218_p6), %s320_s16, 4294966256  ;;  %s1748_s30 = sshll.u32 %s2792_s23, 6  ;;  %s337_s26 = scalar_lea.sflag [#allocation9], %s2792_s23 }
  0xa4   : > { %s2807_s13 = scalar_lea.vmem [#allocation7], %s1748_s30  ;;  %s339_s20 = scalar_lea.vmem [#allocation8], %s2792_s23 }
  0xa5   : > { %2439 = dma.done.wait (%p3218_p6), %s337_s26, 16  }
  0xa6   : > { %2441 = vsyncadd (%p3218_p6), %s337_s26, 4294967280  ;;  %s2816_s29 = sshll.u32 %s2472_s24, 6  ;;  %p389_p4 = scmp.lt.s32.totalorder %s2476_s25, 2  ;;  %v2196_v0 = vld [vmem:[%s314_s21] sm:$0xff]   ;;  %v2197_v1 = vld [vmem:[%s314_s21 + $0x8] sm:$0xff]   ;;  %vm647_vm0 = vcmask 261120  }
  0xa7   : > { %p391_p12 = scmp.lt.s32.totalorder %s2816_s29, 127  ;;  %1911 = vmatprep.subr.bf16.mxu0 %v2196_v0  ;;  %v2230_v11 = vld [vmem:[%s2807_s13] sm:$0xff]   ;;  %v2231_v12 = vld [vmem:[%s2807_s13 + $0x8] sm:$0xff]   ;;  %v2232_v14 = vld [vmem:[%s2807_s13 + $0x10] sm:$0xff]   ;;  %s385_s24 = sand.u32 1, %s2452_s19  }
  0xa8   : > { %s390_s6 = scalar_select %p389_p4, %s2476_s25, 2  ;;  %1912 = vmatpush3.bf16.msra.mxu0 %v2196_v0  ;;  %2059 = vmatprep.subr.bf16.mxu1 %v2230_v11  ;;  %v2233_v16 = vld [vmem:[%s2807_s13 + $0x18] sm:$0xff]   ;;  %v2234_v18 = vld [vmem:[%s2807_s13 + $0x20] sm:$0xff]   ;;  %v2235_v20 = vld [vmem:[%s2807_s13 + $0x28] sm:$0xff]  }
  0xa9   : > { %s392_s18 = scalar_select %p391_p12, %s2816_s29, 127  ;;  %1913 = vmatprep.subr.bf16.mxu0 %v2197_v1  ;;  %2067 = vmatpush3.bf16.msra.mxu1 %v2230_v11  ;;  %v2236_v32 = vld [vmem:[%s2807_s13 + $0x30] sm:$0xff]   ;;  %v2237_v34 = vld [vmem:[%s2807_s13 + $0x38] sm:$0xff]  }
  0xaa   : > { %s1751_s17 = sshll.u32 %s390_s6, 7  ;;  %2060 = vmatprep.subr.bf16.mxu1 %v2231_v12  ;;  %v2901_v42 = vld [vmem:[%s322_s8] ss:$0 sm:$0xff]  ;;  %s1749_s9 = sshll.u32 %s385_s24, 9 }
  0xab   : > { %s394_s7 = sadd.s32 %s1751_s17, %s392_s18  ;;  %s2976_s11 = scalar_lea.vmem [#allocation10], %s1749_s9 }
  0xac   : > { %s1752_s2 = sshll.u32 %s394_s7, 2  ;;  %1914 = vmatpush3.bf16.msra.mxu0 %v2197_v1  ;;  %s1831_s23 = sshll.u32 %s2476_s25, 7 }
  0xad   : > { %s2825_s12 = scalar_lea.vmem %s3177_s0, %s1752_s2  ;;  %1979 = vmatprep.subr.bf16.mxu0 %v2230_v11  ;;  %2068 = vmatpush3.bf16.msra.mxu1 %v2231_v12  ;;  %s1566_s21 = sadd.s32 %s1831_s23, %s2816_s29 }
  0xae   : > { %v2198_v2 = vld [vmem:[%s2825_s12] sm:$0xff]   ;;  %v2199_v3 = vld [vmem:[%s2825_s12 + $0x8] sm:$0xff]   ;;  %v2200_v4 = vld [vmem:[%s2825_s12 + $0x10] sm:$0xff]   ;;  %2061 = vmatprep.subr.bf16.mxu1 %v2232_v14  ;;  %s1832_s25 = sshll.u32 %s1566_s21, 7  ;;  %s1569_s10 = sshll.u32 %s2976_s11, 4  ;;  %s3108_s10 = int_to_ptr.vmem [resolvable:$true] %s1569_s10 }
  0xaf   : > { %1915 = vmatprep.mubr.msk.bf16.mxu0 %vm647_vm0, %v2198_v2  ;;  %v2201_v5 = vld [vmem:[%s2825_s12 + $0x18] sm:$0xff]   ;;  %v2202_v6 = vld [vmem:[%s2825_s12 + $0x20] sm:$0xff]   ;;  %v2203_v7 = vld [vmem:[%s2825_s12 + $0x28] sm:$0xff]   ;;  %s3103_s30 = scalar_lea.hbm %s3182_s5, %s1832_s25  ;;  %s3116_s13 = scalar_lea.sflag [#allocation4], %s385_s24 }
  0xb0   : > { %1916 = vmatmul.mubr.msk.bf16.vlgmr.msra.gmra.mrb[0].mxu0 %vm647_vm0, %v2199_v3  ;;  %v2204_v8 = vld [vmem:[%s2825_s12 + $0x30] sm:$0xff]   ;;  %v2205_v9 = vld [vmem:[%s2825_s12 + $0x38] sm:$0xff]   ;;  %v2206_v10 = vld [vmem:[%s2825_s12 + $0x40] sm:$0xff]   ;;  %s2358_s26 = scalar_lea.vmem %s3108_s10, 8192  ;;  %p3219_p1 = scmp.ne.s32.totalorder %s3204_s15, 0 }
  0xb1   : > { %1919 = vmatprep.mubr.msk.bf16.mxu0 %vm647_vm0, %v2200_v4  ;;  %v2207_v13 = vld [vmem:[%s2825_s12 + $0x48] sm:$0xff]   ;;  %1980 = vmatpush3.bf16.msra.mxu0 %v2230_v11  ;;  %v2208_v15 = vld [vmem:[%s2825_s12 + $0x50] sm:$0xff]   ;;  %v2209_v17 = vld [vmem:[%s2825_s12 + $0x58] sm:$0xff]   ;;  %p2359_p0 = scmp.ne.s32.totalorder %s3108_s10, %s2358_s26 }
  0xb2   : > { %1981 = vmatprep.subr.bf16.mxu0 %v2231_v12  ;;  %2069 = vmatpush3.bf16.msra.mxu1 %v2232_v14  ;;  %v2210_v19 = vld [vmem:[%s2825_s12 + $0x60] sm:$0xff]   ;;  %v2211_v21 = vld [vmem:[%s2825_s12 + $0x68] sm:$0xff]   ;;  %v2212_v22 = vld [vmem:[%s2825_s12 + $0x70] sm:$0xff]  }
  0xb3   : > { %2062 = vmatprep.subr.bf16.mxu1 %v2233_v16  ;;  %v2213_v23 = vld [vmem:[%s2825_s12 + $0x78] sm:$0xff]   ;;  %v2214_v24 = vld [vmem:[%s2825_s12 + $0x80] sm:$0xff]   ;;  %v2215_v25 = vld [vmem:[%s2825_s12 + $0x88] sm:$0xff]   ;;  %p2360_p13 = pnand %p2359_p0, %p3219_p1 }
  0xb4   : > { %v2216_v26 = vld [vmem:[%s2825_s12 + $0x90] sm:$0xff]   ;;  %v2217_v27 = vld [vmem:[%s2825_s12 + $0x98] sm:$0xff]   ;;  %v2218_v28 = vld [vmem:[%s2825_s12 + $0xa0] sm:$0xff]  }
  0xb5   : > { %1982 = vmatpush3.bf16.msra.mxu0 %v2231_v12  ;;  %v2219_v29 = vld [vmem:[%s2825_s12 + $0xa8] sm:$0xff]   ;;  %v2220_v30 = vld [vmem:[%s2825_s12 + $0xb0] sm:$0xff]   ;;  %v2221_v31 = vld [vmem:[%s2825_s12 + $0xb8] sm:$0xff]   ;;  %p2361_p2 = pneg %p2360_p13 }
  0xb6   : > { %1983 = vmatprep.subr.bf16.mxu0 %v2232_v14  ;;  %2070 = vmatpush3.bf16.msra.mxu1 %v2233_v16  ;;  %v2222_v33 = vld [vmem:[%s2825_s12 + $0xc0] sm:$0xff]   ;;  %v2223_v35 = vld [vmem:[%s2825_s12 + $0xc8] sm:$0xff]   ;;  %v2224_v36 = vld [vmem:[%s2825_s12 + $0xd0] sm:$0xff]  }
  0xb7   : > { %2063 = vmatprep.subr.bf16.mxu1 %v2234_v18  ;;  %v2225_v37 = vld [vmem:[%s2825_s12 + $0xd8] sm:$0xff]   ;;  %v2226_v38 = vld [vmem:[%s2825_s12 + $0xe0] sm:$0xff]   ;;  %v2227_v39 = vld [vmem:[%s2825_s12 + $0xe8] sm:$0xff]  }
  0xb8   : > { %1920 = vmatmul.mubr.msk.bf16.gmra.mrb[4].mxu0 %vm647_vm0, %v2201_v5  ;;  %v2228_v40 = vld [vmem:[%s2825_s12 + $0xf0] sm:$0xff]   ;;  %v2229_v41 = vld [vmem:[%s2825_s12 + $0xf8] sm:$0xff]  }
  0xb9   : > { %1923 = vmatprep.mubr.msk.bf16.mxu0 %vm647_vm0, %v2202_v6  ;;  %1984 = vmatpush3.bf16.msra.mxu0 %v2232_v14 }
  0xba   : > { %1985 = vmatprep.subr.bf16.mxu0 %v2233_v16  ;;  %2071 = vmatpush3.bf16.msra.mxu1 %v2234_v18 }
  0xbb   : > { %2064 = vmatprep.subr.bf16.mxu1 %v2235_v20 }
  0xbd   : > { %1986 = vmatpush3.bf16.msra.mxu0 %v2233_v16 }
  0xbe   : > { %1987 = vmatprep.subr.bf16.mxu0 %v2234_v18  ;;  %2072 = vmatpush3.bf16.msra.mxu1 %v2235_v20 }
  0xbf   : > { %2065 = vmatprep.subr.bf16.mxu1 %v2236_v32 }
  0xc0   : > { %1924 = vmatmul.mubr.msk.bf16.gmra.mrb[8].mxu0 %vm647_vm0, %v2203_v7 }
  0xc1   : > { %1927 = vmatprep.mubr.msk.bf16.mxu0 %vm647_vm0, %v2204_v8  ;;  %1988 = vmatpush3.bf16.msra.mxu0 %v2234_v18 }
  0xc2   : > { %1989 = vmatprep.subr.bf16.mxu0 %v2235_v20  ;;  %2073 = vmatpush3.bf16.msra.mxu1 %v2236_v32 }
  0xc3   : > { %2066 = vmatprep.subr.bf16.mxu1 %v2237_v34 }
  0xc5   : > { %1990 = vmatpush3.bf16.msra.mxu0 %v2235_v20 }
  0xc6   : > { %1991 = vmatprep.subr.bf16.mxu0 %v2236_v32  ;;  %2074 = vmatpush3.bf16.msra.mxu1 %v2237_v34 }
  0xc8   : > { %1928 = vmatmul.mubr.msk.bf16.gmra.mrb[12].mxu0 %vm647_vm0, %v2205_v9 }
  0xc9   : > { %1931 = vmatprep.mubr.msk.bf16.mxu0 %vm647_vm0, %v2206_v10  ;;  %1992 = vmatpush3.bf16.msra.mxu0 %v2236_v32 }
  0xca   : > { %1993 = vmatprep.subr.bf16.mxu0 %v2237_v34 }
  0xcd   : > { %1994 = vmatpush3.bf16.msra.mxu0 %v2237_v34 }
  0xd0   : > { %1932 = vmatmul.mubr.msk.bf16.gmra.mrb[16].mxu0 %vm647_vm0, %v2207_v13 }
  0xd1   : > { %1935 = vmatprep.mubr.msk.bf16.mxu0 %vm647_vm0, %v2208_v15 }
  0xd8   : > { %1936 = vmatmul.mubr.msk.bf16.gmra.mrb[20].mxu0 %vm647_vm0, %v2209_v17 }
  0xd9   : > { %1939 = vmatprep.mubr.msk.bf16.mxu0 %vm647_vm0, %v2210_v19 }
  0xe0   : > { %1940 = vmatmul.mubr.msk.bf16.gmra.mrb[24].mxu0 %vm647_vm0, %v2211_v21 }
  0xe1   : > { %1943 = vmatprep.mubr.msk.bf16.mxu0 %vm647_vm0, %v2212_v22 }
  0xe8   : > { %1944 = vmatmul.mubr.msk.bf16.gmra.mrb[28].mxu0 %vm647_vm0, %v2213_v23 }
  0xe9   : > { %1947 = vmatprep.mubr.msk.bf16.mxu0 %vm647_vm0, %v2214_v24 }
  0xf0   : > { %1948 = vmatmul.mubr.msk.bf16.gmra.mrb[32].mxu0 %vm647_vm0, %v2215_v25 }
  0xf1   : > { %1951 = vmatprep.mubr.msk.bf16.mxu0 %vm647_vm0, %v2216_v26 }
  0xf8   : > { %1952 = vmatmul.mubr.msk.bf16.gmra.mrb[36].mxu0 %vm647_vm0, %v2217_v27 }
  0xf9   : > { %1955 = vmatprep.mubr.msk.bf16.mxu0 %vm647_vm0, %v2218_v28 }
 0x100   : > { %1956 = vmatmul.mubr.msk.bf16.gmra.mrb[40].mxu0 %vm647_vm0, %v2219_v29 }
 0x101   : > { %1959 = vmatprep.mubr.msk.bf16.mxu0 %vm647_vm0, %v2220_v30 }
 0x108   : > { %1960 = vmatmul.mubr.msk.bf16.gmra.mrb[44].mxu0 %vm647_vm0, %v2221_v31 }
 0x109   : > { %1963 = vmatprep.mubr.msk.bf16.mxu0 %vm647_vm0, %v2222_v33 }
 0x110   : > { %1964 = vmatmul.mubr.msk.bf16.gmra.mrb[48].mxu0 %vm647_vm0, %v2223_v35 }
 0x111   : > { %1967 = vmatprep.mubr.msk.bf16.mxu0 %vm647_vm0, %v2224_v36 }
 0x118   : > { %1968 = vmatmul.mubr.msk.bf16.gmra.mrb[52].mxu0 %vm647_vm0, %v2225_v37 }
 0x119   : > { %1971 = vmatprep.mubr.msk.bf16.mxu0 %vm647_vm0, %v2226_v38 }
 0x120   : > { %1972 = vmatmul.mubr.msk.bf16.gmra.mrb[56].mxu0 %vm647_vm0, %v2227_v39 }
 0x121   : > { %1975 = vmatprep.mubr.msk.bf16.mxu0 %vm647_vm0, %v2228_v40 }
 0x128   : > { %1976 = vmatmul.mubr.msk.bf16.gmra.mrb[60].mxu0 %vm647_vm0, %v2229_v41 }
 0x183   : > { %v1917_v43 = vpop.f32.mrb[0].mxu0 }
 0x184   : > { %v787_v44 = vadd.f32 %v1917_v43, %v2901_v42  ;;  %v778_v45 = vpop.f32.mrb[1].mxu0 }
 0x185   : > { %v779_v46 = vadd.f32 %v2901_v42, %v778_v45  ;;  %v1918_v47 = vpop.f32.mrb[2].mxu0 }
 0x186   : > { %v790_v48 = vadd.f32 %v1918_v47, %v2901_v42  ;;  %v781_v49 = vpop.f32.mrb[3].mxu0  ;;  %v1035_v51 = vmax.f32 %v787_v44, 0.0 }
 0x187   : > { %v782_v50 = vadd.f32 %v2901_v42, %v781_v49  ;;  %v1033_v53 = vmax.f32 %v779_v46, 0.0 }
 0x188   : > { %v1036_v52 = vmax.f32 %v790_v48, 0.0 }
 0x189   : > { %v1034_v54 = vmax.f32 %v782_v50, 0.0 }
 0x18a   : > { %v1098_v55 = vpack.c.bf16 %v1036_v52, %v1035_v51 }
 0x18b   : > { %v1097_v56 = vpack.c.bf16 %v1034_v54, %v1033_v53  ;;  %v1921_v57 = vpop.f32.mrb[4].mxu0 }
 0x18c   : > { %v803_v58 = vadd.f32 %v1921_v57, %v2901_v42  ;;  %v794_v59 = vpop.f32.mrb[5].mxu0 }
 0x18d   : > { %v795_v60 = vadd.f32 %v2901_v42, %v794_v59  ;;  %v1922_v61 = vpop.f32.mrb[6].mxu0  ;;  %1995 = vmatprep.mubr.bf16.mxu0 %v1097_v56 }
 0x18e   : > { %v806_v62 = vadd.f32 %v1922_v61, %v2901_v42  ;;  %v797_v63 = vpop.f32.mrb[7].mxu0  ;;  %1996 = vmatmul.mubr.bf16.vlgmr.msra.gmra.mrb[64].mxu0 %v1098_v55  ;;  %v1039_v1 = vmax.f32 %v803_v58, 0.0 }
 0x18f   : > { %v798_v0 = vadd.f32 %v2901_v42, %v797_v63  ;;  %v1037_v3 = vmax.f32 %v795_v60, 0.0 }
 0x190   : > { %v1040_v2 = vmax.f32 %v806_v62, 0.0 }
 0x191   : > { %v1038_v4 = vmax.f32 %v798_v0, 0.0 }
 0x192   : > { %v1100_v5 = vpack.c.bf16 %v1040_v2, %v1039_v1 }
 0x193   : > { %v1925_v6 = vpop.f32.mrb[8].mxu0  ;;  %v1099_v7 = vpack.c.bf16 %v1038_v4, %v1037_v3 }
 0x194   : > { %v819_v8 = vadd.f32 %v1925_v6, %v2901_v42  ;;  %v810_v9 = vpop.f32.mrb[9].mxu0 }
 0x195   : > { %v811_v10 = vadd.f32 %v2901_v42, %v810_v9  ;;  %v1926_v11 = vpop.f32.mrb[10].mxu0  ;;  %1999 = vmatprep.mubr.bf16.mxu1 %v1099_v7 }
 0x196   : > { %v822_v12 = vadd.f32 %v1926_v11, %v2901_v42  ;;  %v813_v13 = vpop.f32.mrb[11].mxu0  ;;  %2000 = vmatmul.mubr.bf16.vlgmr.msra.gmra.mrb[0].mxu1 %v1100_v5  ;;  %v1043_v15 = vmax.f32 %v819_v8, 0.0 }
 0x197   : > { %v814_v14 = vadd.f32 %v2901_v42, %v813_v13  ;;  %v1041_v17 = vmax.f32 %v811_v10, 0.0 }
 0x198   : > { %v1044_v16 = vmax.f32 %v822_v12, 0.0 }
 0x199   : > { %v1042_v18 = vmax.f32 %v814_v14, 0.0 }
 0x19a   : > { %v1102_v19 = vpack.c.bf16 %v1044_v16, %v1043_v15 }
 0x19b   : > { %v1101_v20 = vpack.c.bf16 %v1042_v18, %v1041_v17  ;;  %v1929_v21 = vpop.f32.mrb[12].mxu0 }
 0x19c   : > { %v835_v22 = vadd.f32 %v1929_v21, %v2901_v42  ;;  %v826_v23 = vpop.f32.mrb[13].mxu0 }
 0x19d   : > { %v827_v24 = vadd.f32 %v2901_v42, %v826_v23  ;;  %v1930_v25 = vpop.f32.mrb[14].mxu0  ;;  %2003 = vmatprep.mubr.bf16.mxu1 %v1101_v20 }
 0x19e   : > { %v838_v26 = vadd.f32 %v1930_v25, %v2901_v42  ;;  %v829_v27 = vpop.f32.mrb[15].mxu0  ;;  %2004 = vmatmul.mubr.bf16.gmra.mrb[4].mxu1 %v1102_v19  ;;  %v1047_v29 = vmax.f32 %v835_v22, 0.0 }
 0x19f   : > { %v830_v28 = vadd.f32 %v2901_v42, %v829_v27  ;;  %v1045_v31 = vmax.f32 %v827_v24, 0.0 }
 0x1a0   : > { %v1048_v30 = vmax.f32 %v838_v26, 0.0 }
 0x1a1   : > { %v1046_v32 = vmax.f32 %v830_v28, 0.0 }
 0x1a2   : > { %v1104_v33 = vpack.c.bf16 %v1048_v30, %v1047_v29 }
 0x1a3   : > { %v1103_v34 = vpack.c.bf16 %v1046_v32, %v1045_v31  ;;  %v1933_v35 = vpop.f32.mrb[16].mxu0 }
 0x1a4   : > { %v851_v36 = vadd.f32 %v1933_v35, %v2901_v42  ;;  %v842_v37 = vpop.f32.mrb[17].mxu0 }
 0x1a5   : > { %v843_v38 = vadd.f32 %v2901_v42, %v842_v37  ;;  %v1934_v39 = vpop.f32.mrb[18].mxu0  ;;  %2007 = vmatprep.mubr.bf16.mxu1 %v1103_v34 }
 0x1a6   : > { %v854_v40 = vadd.f32 %v1934_v39, %v2901_v42  ;;  %v845_v41 = vpop.f32.mrb[19].mxu0  ;;  %2008 = vmatmul.mubr.bf16.gmra.mrb[8].mxu1 %v1104_v33  ;;  %v1051_v44 = vmax.f32 %v851_v36, 0.0 }
 0x1a7   : > { %v846_v43 = vadd.f32 %v2901_v42, %v845_v41  ;;  %v1049_v46 = vmax.f32 %v843_v38, 0.0 }
 0x1a8   : > { %v1052_v45 = vmax.f32 %v854_v40, 0.0 }
 0x1a9   : > { %v1050_v47 = vmax.f32 %v846_v43, 0.0 }
 0x1aa   : > { %v1106_v48 = vpack.c.bf16 %v1052_v45, %v1051_v44 }
 0x1ab   : > { %v1105_v49 = vpack.c.bf16 %v1050_v47, %v1049_v46  ;;  %v1937_v50 = vpop.f32.mrb[20].mxu0 }
 0x1ac   : > { %v867_v51 = vadd.f32 %v1937_v50, %v2901_v42  ;;  %v858_v52 = vpop.f32.mrb[21].mxu0 }
 0x1ad   : > { %v859_v53 = vadd.f32 %v2901_v42, %v858_v52  ;;  %v1938_v54 = vpop.f32.mrb[22].mxu0  ;;  %2011 = vmatprep.mubr.bf16.mxu1 %v1105_v49 }
 0x1ae   : > { %v870_v55 = vadd.f32 %v1938_v54, %v2901_v42  ;;  %v861_v56 = vpop.f32.mrb[23].mxu0  ;;  %2012 = vmatmul.mubr.bf16.gmra.mrb[12].mxu1 %v1106_v48  ;;  %v1055_v58 = vmax.f32 %v867_v51, 0.0 }
 0x1af   : > { %v862_v57 = vadd.f32 %v2901_v42, %v861_v56  ;;  %v1053_v60 = vmax.f32 %v859_v53, 0.0 }
 0x1b0   : > { %v1056_v59 = vmax.f32 %v870_v55, 0.0 }
 0x1b1   : > { %v1054_v61 = vmax.f32 %v862_v57, 0.0 }
 0x1b2   : > { %v1108_v62 = vpack.c.bf16 %v1056_v59, %v1055_v58 }
 0x1b3   : > { %v1107_v63 = vpack.c.bf16 %v1054_v61, %v1053_v60  ;;  %v1941_v0 = vpop.f32.mrb[24].mxu0 }
 0x1b4   : > { %v883_v1 = vadd.f32 %v1941_v0, %v2901_v42  ;;  %v874_v2 = vpop.f32.mrb[25].mxu0 }
 0x1b5   : > { %v875_v3 = vadd.f32 %v2901_v42, %v874_v2  ;;  %v1942_v4 = vpop.f32.mrb[26].mxu0  ;;  %2015 = vmatprep.mubr.bf16.mxu1 %v1107_v63 }
 0x1b6   : > { %v886_v5 = vadd.f32 %v1942_v4, %v2901_v42  ;;  %v877_v6 = vpop.f32.mrb[27].mxu0  ;;  %2016 = vmatmul.mubr.bf16.gmra.mrb[16].mxu1 %v1108_v62  ;;  %v1059_v8 = vmax.f32 %v883_v1, 0.0 }
 0x1b7   : > { %v878_v7 = vadd.f32 %v2901_v42, %v877_v6  ;;  %v1057_v10 = vmax.f32 %v875_v3, 0.0 }
 0x1b8   : > { %v1060_v9 = vmax.f32 %v886_v5, 0.0 }
 0x1b9   : > { %v1058_v11 = vmax.f32 %v878_v7, 0.0 }
 0x1ba   : > { %v1110_v12 = vpack.c.bf16 %v1060_v9, %v1059_v8 }
 0x1bb   : > { %v1109_v13 = vpack.c.bf16 %v1058_v11, %v1057_v10  ;;  %v1945_v14 = vpop.f32.mrb[28].mxu0 }
 0x1bc   : > { %v899_v15 = vadd.f32 %v1945_v14, %v2901_v42  ;;  %v890_v16 = vpop.f32.mrb[29].mxu0 }
 0x1bd   : > { %v891_v17 = vadd.f32 %v2901_v42, %v890_v16  ;;  %v1946_v18 = vpop.f32.mrb[30].mxu0  ;;  %2019 = vmatprep.mubr.bf16.mxu1 %v1109_v13 }
 0x1be   : > { %v902_v19 = vadd.f32 %v1946_v18, %v2901_v42  ;;  %v893_v20 = vpop.f32.mrb[31].mxu0  ;;  %2020 = vmatmul.mubr.bf16.gmra.mrb[20].mxu1 %v1110_v12  ;;  %v1063_v22 = vmax.f32 %v899_v15, 0.0 }
 0x1bf   : > { %v894_v21 = vadd.f32 %v2901_v42, %v893_v20  ;;  %v1061_v24 = vmax.f32 %v891_v17, 0.0 }
 0x1c0   : > { %v1064_v23 = vmax.f32 %v902_v19, 0.0 }
 0x1c1   : > { %v1062_v25 = vmax.f32 %v894_v21, 0.0 }
 0x1c2   : > { %v1112_v26 = vpack.c.bf16 %v1064_v23, %v1063_v22 }
 0x1c3   : > { %v1111_v27 = vpack.c.bf16 %v1062_v25, %v1061_v24  ;;  %v1949_v28 = vpop.f32.mrb[32].mxu0 }
 0x1c4   : > { %v915_v29 = vadd.f32 %v1949_v28, %v2901_v42  ;;  %v906_v30 = vpop.f32.mrb[33].mxu0 }
 0x1c5   : > { %v907_v31 = vadd.f32 %v2901_v42, %v906_v30  ;;  %v1950_v32 = vpop.f32.mrb[34].mxu0  ;;  %2023 = vmatprep.mubr.bf16.mxu1 %v1111_v27 }
 0x1c6   : > { %v918_v33 = vadd.f32 %v1950_v32, %v2901_v42  ;;  %v909_v34 = vpop.f32.mrb[35].mxu0  ;;  %2024 = vmatmul.mubr.bf16.gmra.mrb[24].mxu1 %v1112_v26  ;;  %v1067_v36 = vmax.f32 %v915_v29, 0.0 }
 0x1c7   : > { %v910_v35 = vadd.f32 %v2901_v42, %v909_v34  ;;  %v1065_v38 = vmax.f32 %v907_v31, 0.0 }
 0x1c8   : > { %v1068_v37 = vmax.f32 %v918_v33, 0.0 }
 0x1c9   : > { %v1066_v39 = vmax.f32 %v910_v35, 0.0 }
 0x1ca   : > { %v1114_v40 = vpack.c.bf16 %v1068_v37, %v1067_v36 }
 0x1cb   : > { %v1113_v41 = vpack.c.bf16 %v1066_v39, %v1065_v38  ;;  %v1953_v43 = vpop.f32.mrb[36].mxu0 }
 0x1cc   : > { %v931_v44 = vadd.f32 %v1953_v43, %v2901_v42  ;;  %v922_v45 = vpop.f32.mrb[37].mxu0 }
 0x1cd   : > { %v923_v46 = vadd.f32 %v2901_v42, %v922_v45  ;;  %v1954_v47 = vpop.f32.mrb[38].mxu0  ;;  %2027 = vmatprep.mubr.bf16.mxu1 %v1113_v41 }
 0x1ce   : > { %v934_v48 = vadd.f32 %v1954_v47, %v2901_v42  ;;  %v925_v49 = vpop.f32.mrb[39].mxu0  ;;  %2028 = vmatmul.mubr.bf16.gmra.mrb[28].mxu1 %v1114_v40  ;;  %v1071_v51 = vmax.f32 %v931_v44, 0.0 }
 0x1cf   : > { %v926_v50 = vadd.f32 %v2901_v42, %v925_v49  ;;  %v1069_v53 = vmax.f32 %v923_v46, 0.0 }
 0x1d0   : > { %v1072_v52 = vmax.f32 %v934_v48, 0.0 }
 0x1d1   : > { %v1070_v54 = vmax.f32 %v926_v50, 0.0 }
 0x1d2   : > { %v1116_v55 = vpack.c.bf16 %v1072_v52, %v1071_v51 }
 0x1d3   : > { %v1115_v56 = vpack.c.bf16 %v1070_v54, %v1069_v53  ;;  %v1957_v57 = vpop.f32.mrb[40].mxu0 }
 0x1d4   : > { %v947_v58 = vadd.f32 %v1957_v57, %v2901_v42  ;;  %v938_v59 = vpop.f32.mrb[41].mxu0 }
 0x1d5   : > { %v939_v60 = vadd.f32 %v2901_v42, %v938_v59  ;;  %v1958_v61 = vpop.f32.mrb[42].mxu0  ;;  %2031 = vmatprep.mubr.bf16.mxu1 %v1115_v56 }
 0x1d6   : > { %v950_v62 = vadd.f32 %v1958_v61, %v2901_v42  ;;  %v941_v63 = vpop.f32.mrb[43].mxu0  ;;  %2032 = vmatmul.mubr.bf16.gmra.mrb[32].mxu1 %v1116_v55  ;;  %v1075_v1 = vmax.f32 %v947_v58, 0.0 }
 0x1d7   : > { %v942_v0 = vadd.f32 %v2901_v42, %v941_v63  ;;  %v1073_v3 = vmax.f32 %v939_v60, 0.0 }
 0x1d8   : > { %v1076_v2 = vmax.f32 %v950_v62, 0.0 }
 0x1d9   : > { %v1074_v4 = vmax.f32 %v942_v0, 0.0 }
 0x1da   : > { %v1118_v5 = vpack.c.bf16 %v1076_v2, %v1075_v1 }
 0x1db   : > { %v1117_v6 = vpack.c.bf16 %v1074_v4, %v1073_v3  ;;  %v1961_v7 = vpop.f32.mrb[44].mxu0 }
 0x1dc   : > { %v963_v8 = vadd.f32 %v1961_v7, %v2901_v42  ;;  %v954_v9 = vpop.f32.mrb[45].mxu0 }
 0x1dd   : > { %v955_v10 = vadd.f32 %v2901_v42, %v954_v9  ;;  %v1962_v11 = vpop.f32.mrb[46].mxu0  ;;  %2035 = vmatprep.mubr.bf16.mxu1 %v1117_v6 }
 0x1de   : > { %v966_v12 = vadd.f32 %v1962_v11, %v2901_v42  ;;  %v957_v13 = vpop.f32.mrb[47].mxu0  ;;  %2036 = vmatmul.mubr.bf16.gmra.mrb[36].mxu1 %v1118_v5  ;;  %v1079_v15 = vmax.f32 %v963_v8, 0.0 }
 0x1df   : > { %v958_v14 = vadd.f32 %v2901_v42, %v957_v13  ;;  %v1077_v17 = vmax.f32 %v955_v10, 0.0 }
 0x1e0   : > { %v1080_v16 = vmax.f32 %v966_v12, 0.0 }
 0x1e1   : > { %v1078_v18 = vmax.f32 %v958_v14, 0.0  ;;  %v2972_v14 = vld [vmem:[%s339_s20] ss:$0 sm:$0xff]  ;;  %s2496_s20 = smov [#allocation10]  }
 0x1e2   : > { %v1120_v19 = vpack.c.bf16 %v1080_v16, %v1079_v15  ;;  %s2362_s29 = sshll.u32 %s2496_s20, 4  ;;  %s2363_s29 = int_to_ptr.vmem [resolvable:$false] %s2362_s29 }
 0x1e3   : > { %v1119_v20 = vpack.c.bf16 %v1078_v18, %v1077_v17  ;;  %v1965_v21 = vpop.f32.mrb[48].mxu0  ;;  %s2364_s6 = scalar_lea.vmem %s2363_s29, 16384  ;;  %p2365_p8 = scmp.lt.s32.totalorder %s3108_s10, %s2363_s29 }
 0x1e4   : > { %v979_v22 = vadd.f32 %v1965_v21, %v2901_v42  ;;  %v970_v23 = vpop.f32.mrb[49].mxu0  ;;  %p2366_p10 = scmp.lt.s32.totalorder %s2364_s6, %s2358_s26 }
 0x1e5   : > { %v971_v24 = vadd.f32 %v2901_v42, %v970_v23  ;;  %v1966_v25 = vpop.f32.mrb[50].mxu0  ;;  %2039 = vmatprep.mubr.bf16.mxu1 %v1119_v20 }
 0x1e6   : > { %v982_v26 = vadd.f32 %v1966_v25, %v2901_v42  ;;  %v973_v27 = vpop.f32.mrb[51].mxu0  ;;  %2040 = vmatmul.mubr.bf16.gmra.mrb[40].mxu1 %v1120_v19  ;;  %v1083_v29 = vmax.f32 %v979_v22, 0.0  ;;  %p2367_p5 = por %p2366_p10, %p2365_p8 }
 0x1e7   : > { %v974_v28 = vadd.f32 %v2901_v42, %v973_v27  ;;  %v1081_v31 = vmax.f32 %v971_v24, 0.0 }
 0x1e8   : > { %v1084_v30 = vmax.f32 %v982_v26, 0.0  ;;  %p2368_p11 = pnand %p2367_p5, %p2361_p2 }
 0x1e9   : > { %v1082_v32 = vmax.f32 %v974_v28, 0.0 }
 0x1ea   : > { %v1122_v33 = vpack.c.bf16 %v1084_v30, %v1083_v29 }
 0x1eb   : > { %v1121_v34 = vpack.c.bf16 %v1082_v32, %v1081_v31  ;;  %v1969_v35 = vpop.f32.mrb[52].mxu0 }
 0x1ec   : > { %v995_v36 = vadd.f32 %v1969_v35, %v2901_v42  ;;  %v986_v37 = vpop.f32.mrb[53].mxu0 }
 0x1ed   : > { %v987_v38 = vadd.f32 %v2901_v42, %v986_v37  ;;  %v1970_v39 = vpop.f32.mrb[54].mxu0  ;;  %2043 = vmatprep.mubr.bf16.mxu1 %v1121_v34 }
 0x1ee   : > { %v998_v40 = vadd.f32 %v1970_v39, %v2901_v42  ;;  %v989_v41 = vpop.f32.mrb[55].mxu0  ;;  %2044 = vmatmul.mubr.bf16.gmra.mrb[44].mxu1 %v1122_v33  ;;  %v1087_v44 = vmax.f32 %v995_v36, 0.0 }
 0x1ef   : > { %v990_v43 = vadd.f32 %v2901_v42, %v989_v41  ;;  %v1085_v46 = vmax.f32 %v987_v38, 0.0 }
 0x1f0   : > { %v1088_v45 = vmax.f32 %v998_v40, 0.0 }
 0x1f1   : > { %v1086_v47 = vmax.f32 %v990_v43, 0.0 }
 0x1f2   : > { %v1124_v48 = vpack.c.bf16 %v1088_v45, %v1087_v44 }
 0x1f3   : > { %v1123_v49 = vpack.c.bf16 %v1086_v47, %v1085_v46  ;;  %v1973_v50 = vpop.f32.mrb[56].mxu0 }
 0x1f4   : > { %v1011_v51 = vadd.f32 %v1973_v50, %v2901_v42  ;;  %v1002_v52 = vpop.f32.mrb[57].mxu0 }
 0x1f5   : > { %v1003_v53 = vadd.f32 %v2901_v42, %v1002_v52  ;;  %v1974_v54 = vpop.f32.mrb[58].mxu0  ;;  %2047 = vmatprep.mubr.bf16.mxu1 %v1123_v49 }
 0x1f6   : > { %v1014_v55 = vadd.f32 %v1974_v54, %v2901_v42  ;;  %v1005_v56 = vpop.f32.mrb[59].mxu0  ;;  %2048 = vmatmul.mubr.bf16.gmra.mrb[48].mxu1 %v1124_v48  ;;  %v1091_v58 = vmax.f32 %v1011_v51, 0.0 }
 0x1f7   : > { %v1006_v57 = vadd.f32 %v2901_v42, %v1005_v56  ;;  %v1089_v60 = vmax.f32 %v1003_v53, 0.0 }
 0x1f8   : > { %v1092_v59 = vmax.f32 %v1014_v55, 0.0 }
 0x1f9   : > { %v1090_v61 = vmax.f32 %v1006_v57, 0.0 }
 0x1fa   : > { %v1126_v62 = vpack.c.bf16 %v1092_v59, %v1091_v58 }
 0x1fb   : > { %v1125_v63 = vpack.c.bf16 %v1090_v61, %v1089_v60  ;;  %v1977_v0 = vpop.f32.mrb[60].mxu0 }
 0x1fc   : > { %v1027_v1 = vadd.f32 %v1977_v0, %v2901_v42  ;;  %v1018_v2 = vpop.f32.mrb[61].mxu0 }
 0x1fd   : > { %v1019_v3 = vadd.f32 %v2901_v42, %v1018_v2  ;;  %v1978_v4 = vpop.f32.mrb[62].mxu0  ;;  %2051 = vmatprep.mubr.bf16.mxu1 %v1125_v63 }
 0x1fe   : > { %v1030_v5 = vadd.f32 %v1978_v4, %v2901_v42  ;;  %v1021_v6 = vpop.f32.mrb[63].mxu0  ;;  %2052 = vmatmul.mubr.bf16.gmra.mrb[52].mxu1 %v1126_v62  ;;  %v1095_v8 = vmax.f32 %v1027_v1, 0.0 }
 0x1ff   : > { %v1022_v7 = vadd.f32 %v2901_v42, %v1021_v6  ;;  %v1093_v10 = vmax.f32 %v1019_v3, 0.0 }
 0x200   : > { %v1096_v9 = vmax.f32 %v1030_v5, 0.0 }
 0x201   : > { %v1094_v11 = vmax.f32 %v1022_v7, 0.0 }
 0x202   : > { %v1128_v12 = vpack.c.bf16 %v1096_v9, %v1095_v8 }
 0x203   : > { %v1127_v13 = vpack.c.bf16 %v1094_v11, %v1093_v10 }
 0x205   : > { %2055 = vmatprep.mubr.bf16.mxu1 %v1127_v13 }
 0x206   : > { %2056 = vmatmul.mubr.bf16.gmra.mrb[56].mxu1 %v1128_v12 }
 0x261   : > { %v1997_v15 = vpop.f32.mrb[64].mxu0 }
 0x262   : > { %v1243_v16 = vadd.f32 %v1997_v15, %v2972_v14  ;;  %v1234_v17 = vpop.f32.mrb[65].mxu0 }
 0x263   : > { %v1235_v42 = vadd.f32 %v2972_v14, %v1234_v17  ;;  %v1998_v18 = vpop.f32.mrb[66].mxu0 }
 0x264   : > { %1491 = vst [vmem:[%s2976_s11 + $0x10] sm:$0xff] %v1243_v16  ;;  %v1246_v19 = vadd.f32 %v1998_v18, %v2972_v14  ;;  %v1237_v20 = vpop.f32.mrb[67].mxu0 }
 0x265   : > { %1489 = vst [vmem:[%s2976_s11] sm:$0xff] %v1235_v42  ;;  %v1238_v21 = vadd.f32 %v2972_v14, %v1237_v20 }
 0x266   : > { %1492 = vst [vmem:[%s2976_s11 + $0x18] sm:$0xff] %v1246_v19 }
 0x267   : > { %1490 = vst [vmem:[%s2976_s11 + $0x8] sm:$0xff] %v1238_v21 }
 0x269   : > { %v2001_v22 = vpop.f32.mrb[0].mxu1 }
 0x26a   : > { %v1259_v23 = vadd.f32 %v2001_v22, %v2972_v14  ;;  %v1250_v24 = vpop.f32.mrb[1].mxu1 }
 0x26b   : > { %v1251_v25 = vadd.f32 %v2972_v14, %v1250_v24  ;;  %v2002_v26 = vpop.f32.mrb[2].mxu1 }
 0x26c   : > { %1495 = vst [vmem:[%s2976_s11 + $0x30] sm:$0xff] %v1259_v23  ;;  %v1262_v27 = vadd.f32 %v2002_v26, %v2972_v14  ;;  %v1253_v28 = vpop.f32.mrb[3].mxu1 }
 0x26d   : > { %1493 = vst [vmem:[%s2976_s11 + $0x20] sm:$0xff] %v1251_v25  ;;  %v1254_v29 = vadd.f32 %v2972_v14, %v1253_v28 }
 0x26e   : > { %1496 = vst [vmem:[%s2976_s11 + $0x38] sm:$0xff] %v1262_v27 }
 0x26f   : > { %1494 = vst [vmem:[%s2976_s11 + $0x28] sm:$0xff] %v1254_v29 }
 0x271   : > { %v2005_v30 = vpop.f32.mrb[4].mxu1 }
 0x272   : > { %v1275_v31 = vadd.f32 %v2005_v30, %v2972_v14  ;;  %v1266_v32 = vpop.f32.mrb[5].mxu1 }
 0x273   : > { %v1267_v33 = vadd.f32 %v2972_v14, %v1266_v32  ;;  %v2006_v34 = vpop.f32.mrb[6].mxu1 }
 0x274   : > { %1499 = vst [vmem:[%s2976_s11 + $0x50] sm:$0xff] %v1275_v31  ;;  %v1278_v35 = vadd.f32 %v2006_v34, %v2972_v14  ;;  %v1269_v36 = vpop.f32.mrb[7].mxu1 }
 0x275   : > { %1497 = vst [vmem:[%s2976_s11 + $0x40] sm:$0xff] %v1267_v33  ;;  %v1270_v37 = vadd.f32 %v2972_v14, %v1269_v36 }
 0x276   : > { %1500 = vst [vmem:[%s2976_s11 + $0x58] sm:$0xff] %v1278_v35 }
 0x277   : > { %1498 = vst [vmem:[%s2976_s11 + $0x48] sm:$0xff] %v1270_v37 }
 0x279   : > { %v2009_v38 = vpop.f32.mrb[8].mxu1 }
 0x27a   : > { %v1291_v39 = vadd.f32 %v2009_v38, %v2972_v14  ;;  %v1282_v40 = vpop.f32.mrb[9].mxu1 }
 0x27b   : > { %v1283_v41 = vadd.f32 %v2972_v14, %v1282_v40  ;;  %v2010_v43 = vpop.f32.mrb[10].mxu1 }
 0x27c   : > { %1503 = vst [vmem:[%s2976_s11 + $0x70] sm:$0xff] %v1291_v39  ;;  %v1294_v44 = vadd.f32 %v2010_v43, %v2972_v14  ;;  %v1285_v45 = vpop.f32.mrb[11].mxu1 }
 0x27d   : > { %1501 = vst [vmem:[%s2976_s11 + $0x60] sm:$0xff] %v1283_v41  ;;  %v1286_v46 = vadd.f32 %v2972_v14, %v1285_v45 }
 0x27e   : > { %1504 = vst [vmem:[%s2976_s11 + $0x78] sm:$0xff] %v1294_v44 }
 0x27f   : > { %1502 = vst [vmem:[%s2976_s11 + $0x68] sm:$0xff] %v1286_v46 }
 0x281   : > { %v2013_v47 = vpop.f32.mrb[12].mxu1 }
 0x282   : > { %v1307_v48 = vadd.f32 %v2013_v47, %v2972_v14  ;;  %v1298_v49 = vpop.f32.mrb[13].mxu1 }
 0x283   : > { %v1299_v50 = vadd.f32 %v2972_v14, %v1298_v49  ;;  %v2014_v51 = vpop.f32.mrb[14].mxu1 }
 0x284   : > { %1507 = vst [vmem:[%s2976_s11 + $0x90] sm:$0xff] %v1307_v48  ;;  %v1310_v52 = vadd.f32 %v2014_v51, %v2972_v14  ;;  %v1301_v53 = vpop.f32.mrb[15].mxu1 }
 0x285   : > { %1505 = vst [vmem:[%s2976_s11 + $0x80] sm:$0xff] %v1299_v50  ;;  %v1302_v54 = vadd.f32 %v2972_v14, %v1301_v53 }
 0x286   : > { %1508 = vst [vmem:[%s2976_s11 + $0x98] sm:$0xff] %v1310_v52 }
 0x287   : > { %1506 = vst [vmem:[%s2976_s11 + $0x88] sm:$0xff] %v1302_v54 }
 0x289   : > { %v2017_v55 = vpop.f32.mrb[16].mxu1 }
 0x28a   : > { %v1323_v56 = vadd.f32 %v2017_v55, %v2972_v14  ;;  %v1314_v57 = vpop.f32.mrb[17].mxu1 }
 0x28b   : > { %v1315_v58 = vadd.f32 %v2972_v14, %v1314_v57  ;;  %v2018_v59 = vpop.f32.mrb[18].mxu1 }
 0x28c   : > { %1511 = vst [vmem:[%s2976_s11 + $0xb0] sm:$0xff] %v1323_v56  ;;  %v1326_v60 = vadd.f32 %v2018_v59, %v2972_v14  ;;  %v1317_v61 = vpop.f32.mrb[19].mxu1 }
 0x28d   : > { %1509 = vst [vmem:[%s2976_s11 + $0xa0] sm:$0xff] %v1315_v58  ;;  %v1318_v62 = vadd.f32 %v2972_v14, %v1317_v61 }
 0x28e   : > { %1512 = vst [vmem:[%s2976_s11 + $0xb8] sm:$0xff] %v1326_v60 }
 0x28f   : > { %1510 = vst [vmem:[%s2976_s11 + $0xa8] sm:$0xff] %v1318_v62 }
 0x291   : > { %v2021_v63 = vpop.f32.mrb[20].mxu1 }
 0x292   : > { %v1339_v0 = vadd.f32 %v2021_v63, %v2972_v14  ;;  %v1330_v1 = vpop.f32.mrb[21].mxu1 }
 0x293   : > { %v1331_v2 = vadd.f32 %v2972_v14, %v1330_v1  ;;  %v2022_v3 = vpop.f32.mrb[22].mxu1 }
 0x294   : > { %1515 = vst [vmem:[%s2976_s11 + $0xd0] sm:$0xff] %v1339_v0  ;;  %v1342_v4 = vadd.f32 %v2022_v3, %v2972_v14  ;;  %v1333_v5 = vpop.f32.mrb[23].mxu1 }
 0x295   : > { %1513 = vst [vmem:[%s2976_s11 + $0xc0] sm:$0xff] %v1331_v2  ;;  %v1334_v6 = vadd.f32 %v2972_v14, %v1333_v5 }
 0x296   : > { %1516 = vst [vmem:[%s2976_s11 + $0xd8] sm:$0xff] %v1342_v4 }
 0x297   : > { %1514 = vst [vmem:[%s2976_s11 + $0xc8] sm:$0xff] %v1334_v6 }
 0x299   : > { %v2025_v7 = vpop.f32.mrb[24].mxu1 }
 0x29a   : > { %v1355_v8 = vadd.f32 %v2025_v7, %v2972_v14  ;;  %v1346_v9 = vpop.f32.mrb[25].mxu1 }
 0x29b   : > { %v1347_v10 = vadd.f32 %v2972_v14, %v1346_v9  ;;  %v2026_v11 = vpop.f32.mrb[26].mxu1 }
 0x29c   : > { %1519 = vst [vmem:[%s2976_s11 + $0xf0] sm:$0xff] %v1355_v8  ;;  %v1358_v12 = vadd.f32 %v2026_v11, %v2972_v14  ;;  %v1349_v13 = vpop.f32.mrb[27].mxu1 }
 0x29d   : > { %1517 = vst [vmem:[%s2976_s11 + $0xe0] sm:$0xff] %v1347_v10  ;;  %v1350_v15 = vadd.f32 %v2972_v14, %v1349_v13 }
 0x29e   : > { %1520 = vst [vmem:[%s2976_s11 + $0xf8] sm:$0xff] %v1358_v12 }
 0x29f   : > { %1518 = vst [vmem:[%s2976_s11 + $0xe8] sm:$0xff] %v1350_v15 }
 0x2a1   : > { %v2029_v16 = vpop.f32.mrb[28].mxu1 }
 0x2a2   : > { %v1371_v17 = vadd.f32 %v2029_v16, %v2972_v14  ;;  %v1362_v42 = vpop.f32.mrb[29].mxu1 }
 0x2a3   : > { %v1363_v18 = vadd.f32 %v2972_v14, %v1362_v42  ;;  %v2030_v19 = vpop.f32.mrb[30].mxu1 }
 0x2a4   : > { %1523 = vst [vmem:[%s2976_s11 + $0x110] sm:$0xff] %v1371_v17  ;;  %v1374_v20 = vadd.f32 %v2030_v19, %v2972_v14  ;;  %v1365_v21 = vpop.f32.mrb[31].mxu1 }
 0x2a5   : > { %1521 = vst [vmem:[%s2976_s11 + $0x100] sm:$0xff] %v1363_v18  ;;  %v1366_v22 = vadd.f32 %v2972_v14, %v1365_v21 }
 0x2a6   : > { %1524 = vst [vmem:[%s2976_s11 + $0x118] sm:$0xff] %v1374_v20 }
 0x2a7   : > { %1522 = vst [vmem:[%s2976_s11 + $0x108] sm:$0xff] %v1366_v22 }
 0x2a9   : > { %v2033_v23 = vpop.f32.mrb[32].mxu1 }
 0x2aa   : > { %v1387_v24 = vadd.f32 %v2033_v23, %v2972_v14  ;;  %v1378_v25 = vpop.f32.mrb[33].mxu1 }
 0x2ab   : > { %v1379_v26 = vadd.f32 %v2972_v14, %v1378_v25  ;;  %v2034_v27 = vpop.f32.mrb[34].mxu1 }
 0x2ac   : > { %1527 = vst [vmem:[%s2976_s11 + $0x130] sm:$0xff] %v1387_v24  ;;  %v1390_v28 = vadd.f32 %v2034_v27, %v2972_v14  ;;  %v1381_v29 = vpop.f32.mrb[35].mxu1 }
 0x2ad   : > { %1525 = vst [vmem:[%s2976_s11 + $0x120] sm:$0xff] %v1379_v26  ;;  %v1382_v30 = vadd.f32 %v2972_v14, %v1381_v29 }
 0x2ae   : > { %1528 = vst [vmem:[%s2976_s11 + $0x138] sm:$0xff] %v1390_v28 }
 0x2af   : > { %1526 = vst [vmem:[%s2976_s11 + $0x128] sm:$0xff] %v1382_v30 }
 0x2b1   : > { %v2037_v31 = vpop.f32.mrb[36].mxu1 }
 0x2b2   : > { %v1403_v32 = vadd.f32 %v2037_v31, %v2972_v14  ;;  %v1394_v33 = vpop.f32.mrb[37].mxu1 }
 0x2b3   : > { %v1395_v34 = vadd.f32 %v2972_v14, %v1394_v33  ;;  %v2038_v35 = vpop.f32.mrb[38].mxu1 }
 0x2b4   : > { %1531 = vst [vmem:[%s2976_s11 + $0x150] sm:$0xff] %v1403_v32  ;;  %v1406_v36 = vadd.f32 %v2038_v35, %v2972_v14  ;;  %v1397_v37 = vpop.f32.mrb[39].mxu1 }
 0x2b5   : > { %1529 = vst [vmem:[%s2976_s11 + $0x140] sm:$0xff] %v1395_v34  ;;  %v1398_v38 = vadd.f32 %v2972_v14, %v1397_v37 }
 0x2b6   : > { %1532 = vst [vmem:[%s2976_s11 + $0x158] sm:$0xff] %v1406_v36 }
 0x2b7   : > { %1530 = vst [vmem:[%s2976_s11 + $0x148] sm:$0xff] %v1398_v38 }
 0x2b9   : > { %v2041_v39 = vpop.f32.mrb[40].mxu1 }
 0x2ba   : > { %v1419_v40 = vadd.f32 %v2041_v39, %v2972_v14  ;;  %v1410_v41 = vpop.f32.mrb[41].mxu1 }
 0x2bb   : > { %v1411_v43 = vadd.f32 %v2972_v14, %v1410_v41  ;;  %v2042_v44 = vpop.f32.mrb[42].mxu1 }
 0x2bc   : > { %1535 = vst [vmem:[%s2976_s11 + $0x170] sm:$0xff] %v1419_v40  ;;  %v1422_v45 = vadd.f32 %v2042_v44, %v2972_v14  ;;  %v1413_v46 = vpop.f32.mrb[43].mxu1 }
 0x2bd   : > { %1533 = vst [vmem:[%s2976_s11 + $0x160] sm:$0xff] %v1411_v43  ;;  %v1414_v47 = vadd.f32 %v2972_v14, %v1413_v46 }
 0x2be   : > { %1536 = vst [vmem:[%s2976_s11 + $0x178] sm:$0xff] %v1422_v45 }
 0x2bf   : > { %1534 = vst [vmem:[%s2976_s11 + $0x168] sm:$0xff] %v1414_v47 }
 0x2c1   : > { %v2045_v48 = vpop.f32.mrb[44].mxu1 }
 0x2c2   : > { %v1435_v49 = vadd.f32 %v2045_v48, %v2972_v14  ;;  %v1426_v50 = vpop.f32.mrb[45].mxu1 }
 0x2c3   : > { %v1427_v51 = vadd.f32 %v2972_v14, %v1426_v50  ;;  %v2046_v52 = vpop.f32.mrb[46].mxu1 }
 0x2c4   : > { %1539 = vst [vmem:[%s2976_s11 + $0x190] sm:$0xff] %v1435_v49  ;;  %v1438_v53 = vadd.f32 %v2046_v52, %v2972_v14  ;;  %v1429_v54 = vpop.f32.mrb[47].mxu1 }
 0x2c5   : > { %1537 = vst [vmem:[%s2976_s11 + $0x180] sm:$0xff] %v1427_v51  ;;  %v1430_v55 = vadd.f32 %v2972_v14, %v1429_v54 }
 0x2c6   : > { %1540 = vst [vmem:[%s2976_s11 + $0x198] sm:$0xff] %v1438_v53 }
 0x2c7   : > { %1538 = vst [vmem:[%s2976_s11 + $0x188] sm:$0xff] %v1430_v55 }
 0x2c9   : > { %v2049_v56 = vpop.f32.mrb[48].mxu1 }
 0x2ca   : > { %v1451_v57 = vadd.f32 %v2049_v56, %v2972_v14  ;;  %v1442_v58 = vpop.f32.mrb[49].mxu1 }
 0x2cb   : > { %v1443_v59 = vadd.f32 %v2972_v14, %v1442_v58  ;;  %v2050_v60 = vpop.f32.mrb[50].mxu1 }
 0x2cc   : > { %1543 = vst [vmem:[%s2976_s11 + $0x1b0] sm:$0xff] %v1451_v57  ;;  %v1454_v61 = vadd.f32 %v2050_v60, %v2972_v14  ;;  %v1445_v62 = vpop.f32.mrb[51].mxu1 }
 0x2cd   : > { %1541 = vst [vmem:[%s2976_s11 + $0x1a0] sm:$0xff] %v1443_v59  ;;  %v1446_v63 = vadd.f32 %v2972_v14, %v1445_v62 }
 0x2ce   : > { %1544 = vst [vmem:[%s2976_s11 + $0x1b8] sm:$0xff] %v1454_v61 }
 0x2cf   : > { %1542 = vst [vmem:[%s2976_s11 + $0x1a8] sm:$0xff] %v1446_v63 }
 0x2d1   : > { %v2053_v0 = vpop.f32.mrb[52].mxu1 }
 0x2d2   : > { %v1467_v1 = vadd.f32 %v2053_v0, %v2972_v14  ;;  %v1458_v2 = vpop.f32.mrb[53].mxu1 }
 0x2d3   : > { %v1459_v3 = vadd.f32 %v2972_v14, %v1458_v2  ;;  %v2054_v4 = vpop.f32.mrb[54].mxu1 }
 0x2d4   : > { %1547 = vst [vmem:[%s2976_s11 + $0x1d0] sm:$0xff] %v1467_v1  ;;  %v1470_v5 = vadd.f32 %v2054_v4, %v2972_v14  ;;  %v1461_v6 = vpop.f32.mrb[55].mxu1 }
 0x2d5   : > { %1545 = vst [vmem:[%s2976_s11 + $0x1c0] sm:$0xff] %v1459_v3  ;;  %v1462_v7 = vadd.f32 %v2972_v14, %v1461_v6 }
 0x2d6   : > { %1548 = vst [vmem:[%s2976_s11 + $0x1d8] sm:$0xff] %v1470_v5 }
 0x2d7   : > { %1546 = vst [vmem:[%s2976_s11 + $0x1c8] sm:$0xff] %v1462_v7 }
 0x2d9   : > { %v2057_v8 = vpop.f32.mrb[56].mxu1 }
 0x2da   : > { %v1483_v9 = vadd.f32 %v2057_v8, %v2972_v14  ;;  %v1474_v10 = vpop.f32.mrb[57].mxu1 }
 0x2db   : > { %v1475_v11 = vadd.f32 %v2972_v14, %v1474_v10  ;;  %v2058_v12 = vpop.f32.mrb[58].mxu1 }
 0x2dc   : > { %1551 = vst [vmem:[%s2976_s11 + $0x1f0] sm:$0xff] %v1483_v9  ;;  %v1486_v13 = vadd.f32 %v2058_v12, %v2972_v14  ;;  %v1477_v15 = vpop.f32.mrb[59].mxu1 }
 0x2dd   : > { %1549 = vst [vmem:[%s2976_s11 + $0x1e0] sm:$0xff] %v1475_v11  ;;  %v1478_v16 = vadd.f32 %v2972_v14, %v1477_v15 }
 0x2de   : > { %1552 = vst [vmem:[%s2976_s11 + $0x1f8] sm:$0xff] %v1486_v13 }
 0x2df   : > { %1550 = vst [vmem:[%s2976_s11 + $0x1e8] sm:$0xff] %v1478_v16 }
 0x2e0   : > { %2371 = shalt.err (!%p2368_p11)
}
 0x2e1   : > { %s2372_s18 = scalar_lea.hbm %s3103_s30, 8192  ;;  %s2376_s2 = scalar_lea.hbm %s3182_s5, 49152 }
 0x2e2   : > { %p2373_p7 = scmp.ne.s32.totalorder %s3103_s30, %s2372_s18  ;;  %p2377_p6 = scmp.lt.u32.totalorder %s3103_s30, %s3182_s5 }
 0x2e3   : > { %p2378_p4 = scmp.lt.u32.totalorder %s2376_s2, %s2372_s18  ;;  %p2380_p0 = scmp.lt.u32.totalorder %s2372_s18, %s3103_s30 }
 0x2e4   : > { %p2374_p9 = pnand %p2373_p7, %p3219_p1 }
 0x2e5   : > { %p2379_p12 = por %p2378_p4, %p2377_p6 }
 0x2e6   : > { %p2375_p3 = pneg %p2374_p9 }
 0x2e7   : > { %p2381_p13 = por %p2380_p0, %p2379_p12 }
 0x2e9   : > { %p2382_p2 = pnand %p2381_p13, %p2375_p3 }
 0x2eb   : > { %2385 = shalt.err (!%p2382_p2)
}
 0x2ec   : > { %s2497_s12 = smov 128   ;;  %s2498_s24 = smov 8  }
 0x2ed   : > { %2083 = dma.vmem_to_hbm [thread:$0]  (%p3219_p1), %s3108_s10, 8192, %s3103_s30, %s3116_s13, %s2497_s12, %s2497_s12, %s2498_s24  }
 0x2ee PF: > { %s3220_s9 = sld [smem:[#allocation15_spill]]  ;;  %s3221_s11 = sld [smem:[#allocation23_spill]] }
 0x2ef   : > { %p2103_p8 = scmp.ge.s32.totalorder %s2488_s28, 2 }
 0x2f4   : > { %s1584_s23 = sand.u32 1, %s3220_s9   ;;  %p3222_p10 = scmp.ne.s32.totalorder %s3221_s11, 0 }
 0x2f5   : > { %s1585_s21 = scalar_lea.sflag [#allocation4], %s1584_s23 }
 0x2f6   : > { %p2099_p5 = pnand %p2103_p8, %p3222_p10 }
 0x2f8   : > { %2443 = dma.done.wait (!%p2099_p5), %s1585_s21, 8192  }
 0x2f9   : > { %2445 = vsyncadd (!%p2099_p5), %s1585_s21, 4294959104  ;;  %s27_s28 = sadd.s32 1, %s2488_s28   ;;  %s3223_s25 = sld [smem:[#allocation16_spill]] }
 0x2fa   : > { %p24_p11 = scmp.ge.s32.totalorder %s27_s28, 8   ;;  %s3224_s20 = sld [smem:[#allocation22_spill]] }
 0x2fb   : > { %s3225_s15 = sld [smem:[#allocation17_spill]]  ;;  %s3226_s23 = sld [smem:[#allocation21_spill]] }
 0x2fc   : > { %s3227_s24 = sld [smem:[#allocation18_spill]]  ;;  %s3228_s26 = sld [smem:[#allocation19_spill]] }
 0x2fd   : > { %s3229_s10 = sld [smem:[#allocation20_spill]]  ;;  %s3230_s18 = smov %s2452_s19 }
 0x2fe   : > { %s3232_s21 = smov %s2464_s22  ;;  %26 = sbr.rel (!%p24_p11) target bundleno = 16 (0x10), region = 125 }
 0x2ff   : > { %s3231_s19 = smov %s3223_s25  ;;  %s3234_s25 = smov %s2484_s27 }
 0x301   : > { %s3233_s22 = smov %s3225_s15 }
 0x303   : > { %s3235_s27 = smov %s3229_s10 }
 0x305   :  { %1590 = vsyncpa [#allocation3], 1 }
 0x306   :  { %1592 = vsyncpa [#allocation3 + $0x1], 1 }
 0x307   :  { %1593 = vsyncpa [#allocation6], 1 }
 0x308   :  { %1595 = vsyncpa [#allocation6 + $0x1], 1 }
 0x309   :  { %1596 = vsyncpa [#allocation9], 1 }
 0x30a   :  { %1598 = vsyncpa [#allocation9 + $0x1], 1 }
 0x30b   :  { %1599 = vsyncpa [#allocation4], 1 }
 0x30c   :  { %1601 = vsyncpa [#allocation4 + $0x1], 1 }

</bundles_post_ra>
